<compile_context>
chip_gen: v7x
topology: tpu7x:2x2x1
jax: 0.10.0
libtpu: 0.0.40
codegen_flags: <defaults>
</compile_context>

<pallas_src>
import functools

import numpy as np
import jax
import jax.numpy as jnp
from jax.experimental import pallas as pl
from jax.experimental.pallas import tpu as pltpu


def _layer_norm(x, g, b, eps=1e-5):
    mu = jnp.mean(x, axis=-1, keepdims=True)
    var = jnp.mean((x - mu) ** 2, axis=-1, keepdims=True)
    return (x - mu) * jax.lax.rsqrt(var + eps) * g + b


# ---------------- fused kernel: embed (+pe) -> L encoder layers -> output linear -------
def fused_transformer_kernel(u_ref, wemb_ref, bemb_ref, pe_ref,
                             wqkv_ref, bqkv_ref, wo_ref, bo_ref,
                             w1_ref, b1_ref, w2_ref, b2_ref,
                             g1_ref, be1_ref, g2_ref, be2_ref,
                             wout_ref, bout_ref,
                             y_ref, x_scr,
                             *, batch, seq, nhead):
    l = pl.program_id(0)
    D = wqkv_ref.shape[1]
    hd = D // nhead
    bt = batch * seq
    scale = 1.0 / float(np.sqrt(hd))

    # ---- layer 0 only: input embedding (sqrt(d_model) folded into weights) + pos-enc ----
    @pl.when(l == 0)
    def _():
        emb = jnp.dot(u_ref[...], wemb_ref[...], preferred_element_type=jnp.float32)
        emb = emb + bemb_ref[...]
        emb = emb.reshape(batch, seq, D) + pe_ref[...][None]
        x_scr[...] = emb.reshape(bt, D)
        # TODO(synk): nn.Dropout after pos-encoding is identity here (eval/inference mode).

    x = x_scr[...]                                          # (BT, D), persistent in VMEM

    # ---- multi-head self-attention: fused QKV matmul, batched einsums, register accum ----
    qkv = jnp.dot(x, wqkv_ref[0], preferred_element_type=jnp.float32) + bqkv_ref[0]  # (BT, 3D)

    head_outs = []
    for h in range(nhead):                                  # nhead is small & static
        qh = qkv[:, h * hd:(h + 1) * hd].reshape(batch, seq, hd)
        kh = qkv[:, D + h * hd:D + (h + 1) * hd].reshape(batch, seq, hd)
        vh = qkv[:, 2 * D + h * hd:2 * D + (h + 1) * hd].reshape(batch, seq, hd)
        s = jnp.einsum("btd,bsd->bts", qh, kh,
                       preferred_element_type=jnp.float32) * scale
        s = s - jnp.max(s, axis=-1, keepdims=True)          # numerically-safe softmax
        p = jnp.exp(s)
        p = p * pl.reciprocal(jnp.sum(p, axis=-1, keepdims=True))
        oh = jnp.einsum("bts,bsd->btd", p, vh, preferred_element_type=jnp.float32)
        head_outs.append(oh.reshape(bt, hd))
    heads = jnp.concatenate(head_outs, axis=-1)             # (BT, D), register-resident

    attn = jnp.dot(heads, wo_ref[0], preferred_element_type=jnp.float32) + bo_ref[0]

    # ---- residual + LayerNorm1 (post-norm, matches nn.TransformerEncoderLayer default) ----
    x1 = _layer_norm(x + attn, g1_ref[0], be1_ref[0])

    # ---- feed-forward (ReLU) + residual + LayerNorm2 ----
    ff = jnp.dot(x1, w1_ref[0], preferred_element_type=jnp.float32) + b1_ref[0]
    ff = jnp.maximum(ff, 0.0)
    ff = jnp.dot(ff, w2_ref[0], preferred_element_type=jnp.float32) + b2_ref[0]
    x2 = _layer_norm(x1 + ff, g2_ref[0], be2_ref[0])
    x_scr[...] = x2
    # TODO(synk): all intra-layer nn.Dropout calls are identity here (eval/inference mode).

    # ---- last layer only: output linear ----
    @pl.when(l == pl.num_programs(0) - 1)
    def _():
        y_ref[...] = jnp.dot(x2, wout_ref[...],
                             preferred_element_type=jnp.float32) + bout_ref[...]


# ---------------- wrapper --------------------------------------------------------------
def simple_transformer_forward(u, params, *, nhead):
    B, T, M = u.shape
    BT = B * T
    L, D, threeD = params["wqkv"].shape
    F = params["w1"].shape[2]
    P = params["w_out"].shape[1]

    u2 = u.reshape(BT, M)
    pe = params["pe"][:T]                                   # (T, D), broadcast in-kernel

    def full(shape):                                        # layer-invariant input
        return pl.BlockSpec(shape, lambda l: (0,) * len(shape))

    def per_layer(shape):                                   # stacked (L, ...) weight
        n = len(shape)
        return pl.BlockSpec((1,) + shape, lambda l: (l,) + (0,) * n)

    kernel = functools.partial(fused_transformer_kernel, batch=B, seq=T, nhead=nhead)

    y = pl.pallas_call(
        kernel,
        out_shape=jax.ShapeDtypeStruct((BT, P), jnp.float32),
        grid_spec=pltpu.PrefetchScalarGridSpec(
            num_scalar_prefetch=0,
            grid=(L,),
            in_specs=[
                full((BT, M)),             # u2
                full((M, D)),              # w_embed (scale folded)
                full((1, D)),              # b_embed (scale folded)
                full((T, D)),              # pe
                per_layer((D, threeD)),    # wqkv
                per_layer((1, threeD)),    # bqkv
                per_layer((D, D)),         # wo
                per_layer((1, D)),         # bo
                per_layer((D, F)),         # w1
                per_layer((1, F)),         # b1
                per_layer((F, D)),         # w2
                per_layer((1, D)),         # b2
                per_layer((1, D)),         # g1
                per_layer((1, D)),         # be1
                per_layer((1, D)),         # g2
                per_layer((1, D)),         # be2
                full((D, P)),              # w_out
                full((1, P)),              # b_out
            ],
            out_specs=pl.BlockSpec((BT, P), lambda l: (0, 0)),
            scratch_shapes=[pltpu.VMEM((BT, D), jnp.float32)],
        ),
        compiler_params=pltpu.CompilerParams(dimension_semantics=("arbitrary",)),
    )(u2, params["w_embed"], params["b_embed"], pe,
      params["wqkv"], params["bqkv"], params["wo"], params["bo"],
      params["w1"], params["b1"], params["w2"], params["b2"],
      params["g1"], params["be1"], params["g2"], params["be2"],
      params["w_out"], params["b_out"])

    return y.reshape(B, T, P), None      # matches PyTorch return (y_hat, None)


# ---------------- deterministic parameter construction ---------------------------------
def init_params(key, m_dim, p_dim, d_model, nhead, num_layers, dim_feedforward, max_len=64):
    D, F = d_model, dim_feedforward

    def nrm(k, shape, scale=0.05):
        return (scale * jax.random.normal(k, shape)).astype(jnp.float32)

    # positional-encoding table (same formula as PositionalEncoding)
    pos = np.arange(max_len)[:, None].astype(np.float32)
    div = np.exp(np.arange(0, D, 2).astype(np.float32) * (-np.log(10000.0) / D))
    pe = np.zeros((max_len, D), dtype=np.float32)
    pe[:, 0::2] = np.sin(pos * div)
    pe[:, 1::2] = np.cos(pos * div)

    keys = jax.random.split(key, 16)
    sqrt_d = float(np.sqrt(D))
    return {
        "pe": jnp.asarray(pe),
        # sqrt(d_model) scale folded into the embedding weights (exact, compile-time)
        "w_embed": nrm(keys[0], (m_dim, D)) * sqrt_d,
        "b_embed": nrm(keys[1], (1, D)) * sqrt_d,
        "w_out": nrm(keys[2], (D, p_dim)),
        "b_out": nrm(keys[3], (1, p_dim)),
        # stacked per-layer weights, leading axis = layer; QKV fused along columns [q|k|v]
        "wqkv": nrm(keys[4], (num_layers, D, 3 * D)),
        "bqkv": nrm(keys[5], (num_layers, 1, 3 * D)),
        "wo": nrm(keys[6], (num_layers, D, D)),
        "bo": nrm(keys[7], (num_layers, 1, D)),
        "w1": nrm(keys[8], (num_layers, D, F)),
        "b1": nrm(keys[9], (num_layers, 1, F)),
        "w2": nrm(keys[10], (num_layers, F, D)),
        "b2": nrm(keys[11], (num_layers, 1, D)),
        "g1": jnp.ones((num_layers, 1, D), jnp.float32),
        "be1": jnp.zeros((num_layers, 1, D), jnp.float32),
        "g2": jnp.ones((num_layers, 1, D), jnp.float32),
        "be2": jnp.zeros((num_layers, 1, D), jnp.float32),
    }


# ---------------- pure-JAX reference (same math, batch-major 3-D layout) ---------------
def _ln_ref(x, g, b, eps=1e-5):
    mu = jnp.mean(x, -1, keepdims=True)
    var = jnp.mean((x - mu) ** 2, -1, keepdims=True)
    return (x - mu) / jnp.sqrt(var + eps) * g + b


def reference_forward(u, params, *, d_model, nhead):
    B, T, _ = u.shape
    D = d_model
    hd = D // nhead
    x = u @ params["w_embed"] + params["b_embed"]        # sqrt(d_model) already folded in
    x = x + params["pe"][:T][None]
    L = params["wqkv"].shape[0]
    for l in range(L):
        qkv = x @ params["wqkv"][l] + params["bqkv"][l]
        q = qkv[..., 0 * D:1 * D].reshape(B, T, nhead, hd)
        k = qkv[..., 1 * D:2 * D].reshape(B, T, nhead, hd)
        v = qkv[..., 2 * D:3 * D].reshape(B, T, nhead, hd)
        s = jnp.einsum("bthd,bshd->bhts", q, k) / np.sqrt(hd)
        p = jax.nn.softmax(s, axis=-1)
        o = jnp.einsum("bhts,bshd->bthd", p, v).reshape(B, T, D)
        attn = o @ params["wo"][l] + params["bo"][l]
        x = _ln_ref(x + attn, params["g1"][l], params["be1"][l])
        ff = jax.nn.relu(x @ params["w1"][l] + params["b1"][l])
        ff = ff @ params["w2"][l] + params["b2"][l]
        x = _ln_ref(x + ff, params["g2"][l], params["be2"][l])
    return x @ params["w_out"] + params["b_out"]


if __name__ == "__main__":
    B, T, m_dim, p_dim = 2, 8, 4, 3
    d_model, nhead, num_layers = 32, 4, 2
    dim_ff = 4 * d_model

    key = jax.random.PRNGKey(0)
    ku, kp = jax.random.split(key)
    u = jax.random.normal(ku, (B, T, m_dim), dtype=jnp.float32)
    params = init_params(kp, m_dim, p_dim, d_model, nhead, num_layers, dim_ff)

    y, aux = simple_transformer_forward(u, params, nhead=nhead)
    y = jax.block_until_ready(y)
    assert y.shape == (B, T, p_dim) and aux is None

    y_ref = reference_forward(u, params, d_model=d_model, nhead=nhead)
    np.testing.assert_allclose(np.asarray(y), np.asarray(y_ref), rtol=2e-3, atol=2e-3)
    print("KERNEL_OK")
</pallas_src>

<mosaic_0001>
module attributes {stable_mosaic.version = 11 : i64} {
  func.func @fused_transformer_kernel(%arg0: i32, %arg1: memref<16x4xf32, #tpu.memory_space<vmem>>, %arg2: memref<4x32xf32, #tpu.memory_space<vmem>>, %arg3: memref<1x32xf32, #tpu.memory_space<vmem>>, %arg4: memref<8x32xf32, #tpu.memory_space<vmem>>, %arg5: memref<1x32x96xf32, #tpu.memory_space<vmem>>, %arg6: memref<1x1x96xf32, #tpu.memory_space<vmem>>, %arg7: memref<1x32x32xf32, #tpu.memory_space<vmem>>, %arg8: memref<1x1x32xf32, #tpu.memory_space<vmem>>, %arg9: memref<1x32x128xf32, #tpu.memory_space<vmem>>, %arg10: memref<1x1x128xf32, #tpu.memory_space<vmem>>, %arg11: memref<1x128x32xf32, #tpu.memory_space<vmem>>, %arg12: memref<1x1x32xf32, #tpu.memory_space<vmem>>, %arg13: memref<1x1x32xf32, #tpu.memory_space<vmem>>, %arg14: memref<1x1x32xf32, #tpu.memory_space<vmem>>, %arg15: memref<1x1x32xf32, #tpu.memory_space<vmem>>, %arg16: memref<1x1x32xf32, #tpu.memory_space<vmem>>, %arg17: memref<32x3xf32, #tpu.memory_space<vmem>>, %arg18: memref<1x3xf32, #tpu.memory_space<vmem>>, %arg19: memref<16x3xf32, #tpu.memory_space<vmem>>, %arg20: memref<16x32xf32, #tpu.memory_space<vmem>>) attributes {dimension_semantics = [#tpu.dimension_semantics<arbitrary>], iteration_bounds = array<i64: 2>, scalar_prefetch = 0 : i64, scratch_operands = 1 : i64, tpu.core_type = #tpu.core_type<tc>, window_params = [{pipeline_mode = #tpu.pipeline_mode<synchronous>, transform_indices = @transform_0, window_bounds = array<i64: 16, 4>}, {pipeline_mode = #tpu.pipeline_mode<synchronous>, transform_indices = @transform_1, window_bounds = array<i64: 4, 32>}, {pipeline_mode = #tpu.pipeline_mode<synchronous>, transform_indices = @transform_2, window_bounds = array<i64: 1, 32>}, {pipeline_mode = #tpu.pipeline_mode<synchronous>, transform_indices = @transform_3, window_bounds = array<i64: 8, 32>}, {transform_indices = @transform_4, window_bounds = array<i64: 1, 32, 96>}, {transform_indices = @transform_5, window_bounds = array<i64: 1, 1, 96>}, {transform_indices = @transform_6, window_bounds = array<i64: 1, 32, 32>}, {transform_indices = @transform_7, window_bounds = array<i64: 1, 1, 32>}, {transform_indices = @transform_8, window_bounds = array<i64: 1, 32, 128>}, {transform_indices = @transform_9, window_bounds = array<i64: 1, 1, 128>}, {transform_indices = @transform_10, window_bounds = array<i64: 1, 128, 32>}, {transform_indices = @transform_11, window_bounds = array<i64: 1, 1, 32>}, {transform_indices = @transform_12, window_bounds = array<i64: 1, 1, 32>}, {transform_indices = @transform_13, window_bounds = array<i64: 1, 1, 32>}, {transform_indices = @transform_14, window_bounds = array<i64: 1, 1, 32>}, {transform_indices = @transform_15, window_bounds = array<i64: 1, 1, 32>}, {pipeline_mode = #tpu.pipeline_mode<synchronous>, transform_indices = @transform_16, window_bounds = array<i64: 32, 3>}, {pipeline_mode = #tpu.pipeline_mode<synchronous>, transform_indices = @transform_17, window_bounds = array<i64: 1, 3>}, {pipeline_mode = #tpu.pipeline_mode<synchronous>, transform_indices = @transform_18, window_bounds = array<i64: 16, 3>}]} {
    %c0_i32 = arith.constant 0 : i32
    %0 = arith.cmpi eq, %arg0, %c0_i32 : i32
    %1 = arith.extui %0 : i1 to i32
    %c0_i32_0 = arith.constant 0 : i32
    %2 = arith.cmpi ne, %1, %c0_i32_0 : i32
    scf.if %2 {
      %c0_75 = arith.constant 0 : index
      %c0_76 = arith.constant 0 : index
      %177 = vector.load %arg1[%c0_75, %c0_76] : memref<16x4xf32, #tpu.memory_space<vmem>>, vector<16x4xf32>
      %c0_77 = arith.constant 0 : index
      %c0_78 = arith.constant 0 : index
      %178 = vector.load %arg2[%c0_77, %c0_78] : memref<4x32xf32, #tpu.memory_space<vmem>>, vector<4x32xf32>
      %cst_79 = arith.constant dense<0.000000e+00> : vector<16x32xf32>
      %179 = tpu.matmul %177, %178, %cst_79 {dimension_numbers = #tpu.dot_dimension_numbers<[1], [0], [0], [1], [0, 0, 1, 1], [], []>} : vector<16x4xf32>, vector<4x32xf32>, vector<16x32xf32> -> vector<16x32xf32>
      %c0_80 = arith.constant 0 : index
      %c0_81 = arith.constant 0 : index
      %180 = vector.load %arg3[%c0_80, %c0_81] : memref<1x32xf32, #tpu.memory_space<vmem>>, vector<1x32xf32>
      %181 = vector.broadcast %180 : vector<1x32xf32> to vector<16x32xf32>
      %182 = arith.addf %179, %181 : vector<16x32xf32>
      %183 = vector.shape_cast %182 : vector<16x32xf32> to vector<2x8x32xf32>
      %c0_82 = arith.constant 0 : index
      %c0_83 = arith.constant 0 : index
      %184 = vector.load %arg4[%c0_82, %c0_83] : memref<8x32xf32, #tpu.memory_space<vmem>>, vector<8x32xf32>
      %185 = vector.shape_cast %184 : vector<8x32xf32> to vector<1x8x32xf32>
      %186 = vector.broadcast %185 : vector<1x8x32xf32> to vector<2x8x32xf32>
      %187 = arith.addf %183, %186 : vector<2x8x32xf32>
      %188 = vector.shape_cast %187 : vector<2x8x32xf32> to vector<16x32xf32>
      %c0_84 = arith.constant 0 : index
      %c0_85 = arith.constant 0 : index
      %189 = vector.load %arg20[%c0_84, %c0_85] : memref<16x32xf32, #tpu.memory_space<vmem>>, vector<16x32xf32>
      tpu.vector_store %arg20[%c0_84, %c0_85], %188 {strides = array<i32>} : memref<16x32xf32, #tpu.memory_space<vmem>>, vector<16x32xf32>,
    } else {
    }
    %c0 = arith.constant 0 : index
    %c0_1 = arith.constant 0 : index
    %3 = vector.load %arg20[%c0, %c0_1] : memref<16x32xf32, #tpu.memory_space<vmem>>, vector<16x32xf32>
    %c0_2 = arith.constant 0 : index
    %c0_3 = arith.constant 0 : index
    %c0_4 = arith.constant 0 : index
    %4 = vector.load %arg5[%c0_2, %c0_3, %c0_4] : memref<1x32x96xf32, #tpu.memory_space<vmem>>, vector<1x32x96xf32>
    %5 = vector.shape_cast %4 : vector<1x32x96xf32> to vector<32x96xf32>
    %cst = arith.constant dense<0.000000e+00> : vector<16x96xf32>
    %6 = tpu.matmul %3, %5, %cst {dimension_numbers = #tpu.dot_dimension_numbers<[1], [0], [0], [1], [0, 0, 1, 1], [], []>} : vector<16x32xf32>, vector<32x96xf32>, vector<16x96xf32> -> vector<16x96xf32>
    %c0_5 = arith.constant 0 : index
    %c0_6 = arith.constant 0 : index
    %c0_7 = arith.constant 0 : index
    %7 = vector.load %arg6[%c0_5, %c0_6, %c0_7] : memref<1x1x96xf32, #tpu.memory_space<vmem>>, vector<1x1x96xf32>
    %8 = vector.shape_cast %7 : vector<1x1x96xf32> to vector<1x96xf32>
    %9 = vector.broadcast %8 : vector<1x96xf32> to vector<16x96xf32>
    %10 = arith.addf %6, %9 : vector<16x96xf32>
    %11 = vector.extract_strided_slice %10 {offsets = [0, 0], sizes = [16, 8], strides = [1, 1]} : vector<16x96xf32> to vector<16x8xf32>
    %12 = vector.shape_cast %11 : vector<16x8xf32> to vector<2x8x8xf32>
    %13 = vector.extract_strided_slice %10 {offsets = [0, 32], sizes = [16, 8], strides = [1, 1]} : vector<16x96xf32> to vector<16x8xf32>
    %14 = vector.shape_cast %13 : vector<16x8xf32> to vector<2x8x8xf32>
    %15 = vector.extract_strided_slice %10 {offsets = [0, 64], sizes = [16, 8], strides = [1, 1]} : vector<16x96xf32> to vector<16x8xf32>
    %16 = vector.shape_cast %15 : vector<16x8xf32> to vector<2x8x8xf32>
    "tpu.trace_start"() <{level = 10 : i32, message = "btd,bsd->bts"}> : () -> ()
    %cst_8 = arith.constant dense<0.000000e+00> : vector<2x8x8xf32>
    %17 = tpu.matmul %12, %14, %cst_8 {dimension_numbers = #tpu.dot_dimension_numbers<[2], [2], [1], [1], [0, 0, 0, 1, 1, 1], [0], [0]>} : vector<2x8x8xf32>, vector<2x8x8xf32>, vector<2x8x8xf32> -> vector<2x8x8xf32>
    "tpu.trace_stop"() : () -> ()
    %cst_9 = arith.constant 0.353553385 : f32
    %18 = vector.broadcast %cst_9 : f32 to vector<2x8x8xf32>
    %19 = arith.mulf %17, %18 : vector<2x8x8xf32>
    %cst_10 = arith.constant dense<0xFF800000> : vector<2x8xf32>
    %20 = vector.multi_reduction <maximumf>, %19, %cst_10 [2] : vector<2x8x8xf32> to vector<2x8xf32>
    %21 = vector.shape_cast %20 : vector<2x8xf32> to vector<2x8x1xf32>
    %22 = vector.broadcast %21 : vector<2x8x1xf32> to vector<2x8x8xf32>
    %23 = arith.subf %19, %22 : vector<2x8x8xf32>
    %24 = math.exp %23 : vector<2x8x8xf32>
    %cst_11 = arith.constant dense<0.000000e+00> : vector<2x8xf32>
    %25 = vector.multi_reduction <add>, %24, %cst_11 [2] : vector<2x8x8xf32> to vector<2x8xf32>
    %26 = vector.shape_cast %25 : vector<2x8xf32> to vector<2x8x1xf32>
    %27 = tpu.reciprocal %26 : vector<2x8x1xf32> -> vector<2x8x1xf32>
    %28 = vector.broadcast %27 : vector<2x8x1xf32> to vector<2x8x8xf32>
    %29 = arith.mulf %24, %28 : vector<2x8x8xf32>
    "tpu.trace_start"() <{level = 10 : i32, message = "bts,bsd->btd"}> : () -> ()
    %cst_12 = arith.constant dense<0.000000e+00> : vector<2x8x8xf32>
    %30 = tpu.matmul %29, %16, %cst_12 {dimension_numbers = #tpu.dot_dimension_numbers<[2], [1], [1], [2], [0, 0, 0, 1, 1, 2], [0], [0]>} : vector<2x8x8xf32>, vector<2x8x8xf32>, vector<2x8x8xf32> -> vector<2x8x8xf32>
    "tpu.trace_stop"() : () -> ()
    %31 = vector.shape_cast %30 : vector<2x8x8xf32> to vector<16x8xf32>
    %32 = vector.extract_strided_slice %10 {offsets = [0, 8], sizes = [16, 8], strides = [1, 1]} : vector<16x96xf32> to vector<16x8xf32>
    %33 = vector.shape_cast %32 : vector<16x8xf32> to vector<2x8x8xf32>
    %34 = vector.extract_strided_slice %10 {offsets = [0, 40], sizes = [16, 8], strides = [1, 1]} : vector<16x96xf32> to vector<16x8xf32>
    %35 = vector.shape_cast %34 : vector<16x8xf32> to vector<2x8x8xf32>
    %36 = vector.extract_strided_slice %10 {offsets = [0, 72], sizes = [16, 8], strides = [1, 1]} : vector<16x96xf32> to vector<16x8xf32>
    %37 = vector.shape_cast %36 : vector<16x8xf32> to vector<2x8x8xf32>
    "tpu.trace_start"() <{level = 10 : i32, message = "btd,bsd->bts"}> : () -> ()
    %cst_13 = arith.constant dense<0.000000e+00> : vector<2x8x8xf32>
    %38 = tpu.matmul %33, %35, %cst_13 {dimension_numbers = #tpu.dot_dimension_numbers<[2], [2], [1], [1], [0, 0, 0, 1, 1, 1], [0], [0]>} : vector<2x8x8xf32>, vector<2x8x8xf32>, vector<2x8x8xf32> -> vector<2x8x8xf32>
    "tpu.trace_stop"() : () -> ()
    %cst_14 = arith.constant 0.353553385 : f32
    %39 = vector.broadcast %cst_14 : f32 to vector<2x8x8xf32>
    %40 = arith.mulf %38, %39 : vector<2x8x8xf32>
    %cst_15 = arith.constant dense<0xFF800000> : vector<2x8xf32>
    %41 = vector.multi_reduction <maximumf>, %40, %cst_15 [2] : vector<2x8x8xf32> to vector<2x8xf32>
    %42 = vector.shape_cast %41 : vector<2x8xf32> to vector<2x8x1xf32>
    %43 = vector.broadcast %42 : vector<2x8x1xf32> to vector<2x8x8xf32>
    %44 = arith.subf %40, %43 : vector<2x8x8xf32>
    %45 = math.exp %44 : vector<2x8x8xf32>
    %cst_16 = arith.constant dense<0.000000e+00> : vector<2x8xf32>
    %46 = vector.multi_reduction <add>, %45, %cst_16 [2] : vector<2x8x8xf32> to vector<2x8xf32>
    %47 = vector.shape_cast %46 : vector<2x8xf32> to vector<2x8x1xf32>
    %48 = tpu.reciprocal %47 : vector<2x8x1xf32> -> vector<2x8x1xf32>
    %49 = vector.broadcast %48 : vector<2x8x1xf32> to vector<2x8x8xf32>
    %50 = arith.mulf %45, %49 : vector<2x8x8xf32>
    "tpu.trace_start"() <{level = 10 : i32, message = "bts,bsd->btd"}> : () -> ()
    %cst_17 = arith.constant dense<0.000000e+00> : vector<2x8x8xf32>
    %51 = tpu.matmul %50, %37, %cst_17 {dimension_numbers = #tpu.dot_dimension_numbers<[2], [1], [1], [2], [0, 0, 0, 1, 1, 2], [0], [0]>} : vector<2x8x8xf32>, vector<2x8x8xf32>, vector<2x8x8xf32> -> vector<2x8x8xf32>
    "tpu.trace_stop"() : () -> ()
    %52 = vector.shape_cast %51 : vector<2x8x8xf32> to vector<16x8xf32>
    %53 = vector.extract_strided_slice %10 {offsets = [0, 16], sizes = [16, 8], strides = [1, 1]} : vector<16x96xf32> to vector<16x8xf32>
    %54 = vector.shape_cast %53 : vector<16x8xf32> to vector<2x8x8xf32>
    %55 = vector.extract_strided_slice %10 {offsets = [0, 48], sizes = [16, 8], strides = [1, 1]} : vector<16x96xf32> to vector<16x8xf32>
    %56 = vector.shape_cast %55 : vector<16x8xf32> to vector<2x8x8xf32>
    %57 = vector.extract_strided_slice %10 {offsets = [0, 80], sizes = [16, 8], strides = [1, 1]} : vector<16x96xf32> to vector<16x8xf32>
    %58 = vector.shape_cast %57 : vector<16x8xf32> to vector<2x8x8xf32>
    "tpu.trace_start"() <{level = 10 : i32, message = "btd,bsd->bts"}> : () -> ()
    %cst_18 = arith.constant dense<0.000000e+00> : vector<2x8x8xf32>
    %59 = tpu.matmul %54, %56, %cst_18 {dimension_numbers = #tpu.dot_dimension_numbers<[2], [2], [1], [1], [0, 0, 0, 1, 1, 1], [0], [0]>} : vector<2x8x8xf32>, vector<2x8x8xf32>, vector<2x8x8xf32> -> vector<2x8x8xf32>
    "tpu.trace_stop"() : () -> ()
    %cst_19 = arith.constant 0.353553385 : f32
    %60 = vector.broadcast %cst_19 : f32 to vector<2x8x8xf32>
    %61 = arith.mulf %59, %60 : vector<2x8x8xf32>
    %cst_20 = arith.constant dense<0xFF800000> : vector<2x8xf32>
    %62 = vector.multi_reduction <maximumf>, %61, %cst_20 [2] : vector<2x8x8xf32> to vector<2x8xf32>
    %63 = vector.shape_cast %62 : vector<2x8xf32> to vector<2x8x1xf32>
    %64 = vector.broadcast %63 : vector<2x8x1xf32> to vector<2x8x8xf32>
    %65 = arith.subf %61, %64 : vector<2x8x8xf32>
    %66 = math.exp %65 : vector<2x8x8xf32>
    %cst_21 = arith.constant dense<0.000000e+00> : vector<2x8xf32>
    %67 = vector.multi_reduction <add>, %66, %cst_21 [2] : vector<2x8x8xf32> to vector<2x8xf32>
    %68 = vector.shape_cast %67 : vector<2x8xf32> to vector<2x8x1xf32>
    %69 = tpu.reciprocal %68 : vector<2x8x1xf32> -> vector<2x8x1xf32>
    %70 = vector.broadcast %69 : vector<2x8x1xf32> to vector<2x8x8xf32>
    %71 = arith.mulf %66, %70 : vector<2x8x8xf32>
    "tpu.trace_start"() <{level = 10 : i32, message = "bts,bsd->btd"}> : () -> ()
    %cst_22 = arith.constant dense<0.000000e+00> : vector<2x8x8xf32>
    %72 = tpu.matmul %71, %58, %cst_22 {dimension_numbers = #tpu.dot_dimension_numbers<[2], [1], [1], [2], [0, 0, 0, 1, 1, 2], [0], [0]>} : vector<2x8x8xf32>, vector<2x8x8xf32>, vector<2x8x8xf32> -> vector<2x8x8xf32>
    "tpu.trace_stop"() : () -> ()
    %73 = vector.shape_cast %72 : vector<2x8x8xf32> to vector<16x8xf32>
    %74 = vector.extract_strided_slice %10 {offsets = [0, 24], sizes = [16, 8], strides = [1, 1]} : vector<16x96xf32> to vector<16x8xf32>
    %75 = vector.shape_cast %74 : vector<16x8xf32> to vector<2x8x8xf32>
    %76 = vector.extract_strided_slice %10 {offsets = [0, 56], sizes = [16, 8], strides = [1, 1]} : vector<16x96xf32> to vector<16x8xf32>
    %77 = vector.shape_cast %76 : vector<16x8xf32> to vector<2x8x8xf32>
    %78 = vector.extract_strided_slice %10 {offsets = [0, 88], sizes = [16, 8], strides = [1, 1]} : vector<16x96xf32> to vector<16x8xf32>
    %79 = vector.shape_cast %78 : vector<16x8xf32> to vector<2x8x8xf32>
    "tpu.trace_start"() <{level = 10 : i32, message = "btd,bsd->bts"}> : () -> ()
    %cst_23 = arith.constant dense<0.000000e+00> : vector<2x8x8xf32>
    %80 = tpu.matmul %75, %77, %cst_23 {dimension_numbers = #tpu.dot_dimension_numbers<[2], [2], [1], [1], [0, 0, 0, 1, 1, 1], [0], [0]>} : vector<2x8x8xf32>, vector<2x8x8xf32>, vector<2x8x8xf32> -> vector<2x8x8xf32>
    "tpu.trace_stop"() : () -> ()
    %cst_24 = arith.constant 0.353553385 : f32
    %81 = vector.broadcast %cst_24 : f32 to vector<2x8x8xf32>
    %82 = arith.mulf %80, %81 : vector<2x8x8xf32>
    %cst_25 = arith.constant dense<0xFF800000> : vector<2x8xf32>
    %83 = vector.multi_reduction <maximumf>, %82, %cst_25 [2] : vector<2x8x8xf32> to vector<2x8xf32>
    %84 = vector.shape_cast %83 : vector<2x8xf32> to vector<2x8x1xf32>
    %85 = vector.broadcast %84 : vector<2x8x1xf32> to vector<2x8x8xf32>
    %86 = arith.subf %82, %85 : vector<2x8x8xf32>
    %87 = math.exp %86 : vector<2x8x8xf32>
    %cst_26 = arith.constant dense<0.000000e+00> : vector<2x8xf32>
    %88 = vector.multi_reduction <add>, %87, %cst_26 [2] : vector<2x8x8xf32> to vector<2x8xf32>
    %89 = vector.shape_cast %88 : vector<2x8xf32> to vector<2x8x1xf32>
    %90 = tpu.reciprocal %89 : vector<2x8x1xf32> -> vector<2x8x1xf32>
    %91 = vector.broadcast %90 : vector<2x8x1xf32> to vector<2x8x8xf32>
    %92 = arith.mulf %87, %91 : vector<2x8x8xf32>
    "tpu.trace_start"() <{level = 10 : i32, message = "bts,bsd->btd"}> : () -> ()
    %cst_27 = arith.constant dense<0.000000e+00> : vector<2x8x8xf32>
    %93 = tpu.matmul %92, %79, %cst_27 {dimension_numbers = #tpu.dot_dimension_numbers<[2], [1], [1], [2], [0, 0, 0, 1, 1, 2], [0], [0]>} : vector<2x8x8xf32>, vector<2x8x8xf32>, vector<2x8x8xf32> -> vector<2x8x8xf32>
    "tpu.trace_stop"() : () -> ()
    %94 = vector.shape_cast %93 : vector<2x8x8xf32> to vector<16x8xf32>
    %95 = tpu.concatenate %31, %52, %73, %94 in 1 : vector<16x8xf32>, vector<16x8xf32>, vector<16x8xf32>, vector<16x8xf32> -> vector<16x32xf32>
    %c0_28 = arith.constant 0 : index
    %c0_29 = arith.constant 0 : index
    %c0_30 = arith.constant 0 : index
    %96 = vector.load %arg7[%c0_28, %c0_29, %c0_30] : memref<1x32x32xf32, #tpu.memory_space<vmem>>, vector<1x32x32xf32>
    %97 = vector.shape_cast %96 : vector<1x32x32xf32> to vector<32x32xf32>
    %cst_31 = arith.constant dense<0.000000e+00> : vector<16x32xf32>
    %98 = tpu.matmul %95, %97, %cst_31 {dimension_numbers = #tpu.dot_dimension_numbers<[1], [0], [0], [1], [0, 0, 1, 1], [], []>} : vector<16x32xf32>, vector<32x32xf32>, vector<16x32xf32> -> vector<16x32xf32>
    %c0_32 = arith.constant 0 : index
    %c0_33 = arith.constant 0 : index
    %c0_34 = arith.constant 0 : index
    %99 = vector.load %arg8[%c0_32, %c0_33, %c0_34] : memref<1x1x32xf32, #tpu.memory_space<vmem>>, vector<1x1x32xf32>
    %100 = vector.shape_cast %99 : vector<1x1x32xf32> to vector<1x32xf32>
    %101 = vector.broadcast %100 : vector<1x32xf32> to vector<16x32xf32>
    %102 = arith.addf %98, %101 : vector<16x32xf32>
    %103 = arith.addf %3, %102 : vector<16x32xf32>
    %c0_35 = arith.constant 0 : index
    %c0_36 = arith.constant 0 : index
    %c0_37 = arith.constant 0 : index
    %104 = vector.load %arg13[%c0_35, %c0_36, %c0_37] : memref<1x1x32xf32, #tpu.memory_space<vmem>>, vector<1x1x32xf32>
    %105 = vector.shape_cast %104 : vector<1x1x32xf32> to vector<1x32xf32>
    %c0_38 = arith.constant 0 : index
    %c0_39 = arith.constant 0 : index
    %c0_40 = arith.constant 0 : index
    %106 = vector.load %arg14[%c0_38, %c0_39, %c0_40] : memref<1x1x32xf32, #tpu.memory_space<vmem>>, vector<1x1x32xf32>
    %107 = vector.shape_cast %106 : vector<1x1x32xf32> to vector<1x32xf32>
    %cst_41 = arith.constant dense<0.000000e+00> : vector<16xf32>
    %108 = vector.multi_reduction <add>, %103, %cst_41 [1] : vector<16x32xf32> to vector<16xf32>
    %109 = vector.shape_cast %108 : vector<16xf32> to vector<16x1xf32>
    %cst_42 = arith.constant 3.200000e+01 : f32
    %110 = vector.broadcast %cst_42 : f32 to vector<16x1xf32>
    %111 = arith.divf %109, %110 : vector<16x1xf32>
    %112 = vector.broadcast %111 : vector<16x1xf32> to vector<16x32xf32>
    %113 = arith.subf %103, %112 : vector<16x32xf32>
    %114 = arith.mulf %113, %113 : vector<16x32xf32>
    %cst_43 = arith.constant dense<0.000000e+00> : vector<16xf32>
    %115 = vector.multi_reduction <add>, %114, %cst_43 [1] : vector<16x32xf32> to vector<16xf32>
    %116 = vector.shape_cast %115 : vector<16xf32> to vector<16x1xf32>
    %cst_44 = arith.constant 3.200000e+01 : f32
    %117 = vector.broadcast %cst_44 : f32 to vector<16x1xf32>
    %118 = arith.divf %116, %117 : vector<16x1xf32>
    %119 = vector.broadcast %111 : vector<16x1xf32> to vector<16x32xf32>
    %120 = arith.subf %103, %119 : vector<16x32xf32>
    %cst_45 = arith.constant 9.99999974E-6 : f32
    %121 = vector.broadcast %cst_45 : f32 to vector<16x1xf32>
    %122 = arith.addf %118, %121 : vector<16x1xf32>
    %123 = math.rsqrt %122 : vector<16x1xf32>
    %124 = vector.broadcast %123 : vector<16x1xf32> to vector<16x32xf32>
    %125 = arith.mulf %120, %124 : vector<16x32xf32>
    %126 = vector.broadcast %105 : vector<1x32xf32> to vector<16x32xf32>
    %127 = arith.mulf %125, %126 : vector<16x32xf32>
    %128 = vector.broadcast %107 : vector<1x32xf32> to vector<16x32xf32>
    %129 = arith.addf %127, %128 : vector<16x32xf32>
    %c0_46 = arith.constant 0 : index
    %c0_47 = arith.constant 0 : index
    %c0_48 = arith.constant 0 : index
    %130 = vector.load %arg9[%c0_46, %c0_47, %c0_48] : memref<1x32x128xf32, #tpu.memory_space<vmem>>, vector<1x32x128xf32>
    %131 = vector.shape_cast %130 : vector<1x32x128xf32> to vector<32x128xf32>
    %cst_49 = arith.constant dense<0.000000e+00> : vector<16x128xf32>
    %132 = tpu.matmul %129, %131, %cst_49 {dimension_numbers = #tpu.dot_dimension_numbers<[1], [0], [0], [1], [0, 0, 1, 1], [], []>} : vector<16x32xf32>, vector<32x128xf32>, vector<16x128xf32> -> vector<16x128xf32>
    %c0_50 = arith.constant 0 : index
    %c0_51 = arith.constant 0 : index
    %c0_52 = arith.constant 0 : index
    %133 = vector.load %arg10[%c0_50, %c0_51, %c0_52] : memref<1x1x128xf32, #tpu.memory_space<vmem>>, vector<1x1x128xf32>
    %134 = vector.shape_cast %133 : vector<1x1x128xf32> to vector<1x128xf32>
    %135 = vector.broadcast %134 : vector<1x128xf32> to vector<16x128xf32>
    %136 = arith.addf %132, %135 : vector<16x128xf32>
    %cst_53 = arith.constant 0.000000e+00 : f32
    %137 = vector.broadcast %cst_53 : f32 to vector<16x128xf32>
    %138 = arith.maximumf %136, %137 : vector<16x128xf32>
    %c0_54 = arith.constant 0 : index
    %c0_55 = arith.constant 0 : index
    %c0_56 = arith.constant 0 : index
    %139 = vector.load %arg11[%c0_54, %c0_55, %c0_56] : memref<1x128x32xf32, #tpu.memory_space<vmem>>, vector<1x128x32xf32>
    %140 = vector.shape_cast %139 : vector<1x128x32xf32> to vector<128x32xf32>
    %cst_57 = arith.constant dense<0.000000e+00> : vector<16x32xf32>
    %141 = tpu.matmul %138, %140, %cst_57 {dimension_numbers = #tpu.dot_dimension_numbers<[1], [0], [0], [1], [0, 0, 1, 1], [], []>} : vector<16x128xf32>, vector<128x32xf32>, vector<16x32xf32> -> vector<16x32xf32>
    %c0_58 = arith.constant 0 : index
    %c0_59 = arith.constant 0 : index
    %c0_60 = arith.constant 0 : index
    %142 = vector.load %arg12[%c0_58, %c0_59, %c0_60] : memref<1x1x32xf32, #tpu.memory_space<vmem>>, vector<1x1x32xf32>
    %143 = vector.shape_cast %142 : vector<1x1x32xf32> to vector<1x32xf32>
    %144 = vector.broadcast %143 : vector<1x32xf32> to vector<16x32xf32>
    %145 = arith.addf %141, %144 : vector<16x32xf32>
    %146 = arith.addf %129, %145 : vector<16x32xf32>
    %c0_61 = arith.constant 0 : index
    %c0_62 = arith.constant 0 : index
    %c0_63 = arith.constant 0 : index
    %147 = vector.load %arg15[%c0_61, %c0_62, %c0_63] : memref<1x1x32xf32, #tpu.memory_space<vmem>>, vector<1x1x32xf32>
    %148 = vector.shape_cast %147 : vector<1x1x32xf32> to vector<1x32xf32>
    %c0_64 = arith.constant 0 : index
    %c0_65 = arith.constant 0 : index
    %c0_66 = arith.constant 0 : index
    %149 = vector.load %arg16[%c0_64, %c0_65, %c0_66] : memref<1x1x32xf32, #tpu.memory_space<vmem>>, vector<1x1x32xf32>
    %150 = vector.shape_cast %149 : vector<1x1x32xf32> to vector<1x32xf32>
    %cst_67 = arith.constant dense<0.000000e+00> : vector<16xf32>
    %151 = vector.multi_reduction <add>, %146, %cst_67 [1] : vector<16x32xf32> to vector<16xf32>
    %152 = vector.shape_cast %151 : vector<16xf32> to vector<16x1xf32>
    %cst_68 = arith.constant 3.200000e+01 : f32
    %153 = vector.broadcast %cst_68 : f32 to vector<16x1xf32>
    %154 = arith.divf %152, %153 : vector<16x1xf32>
    %155 = vector.broadcast %154 : vector<16x1xf32> to vector<16x32xf32>
    %156 = arith.subf %146, %155 : vector<16x32xf32>
    %157 = arith.mulf %156, %156 : vector<16x32xf32>
    %cst_69 = arith.constant dense<0.000000e+00> : vector<16xf32>
    %158 = vector.multi_reduction <add>, %157, %cst_69 [1] : vector<16x32xf32> to vector<16xf32>
    %159 = vector.shape_cast %158 : vector<16xf32> to vector<16x1xf32>
    %cst_70 = arith.constant 3.200000e+01 : f32
    %160 = vector.broadcast %cst_70 : f32 to vector<16x1xf32>
    %161 = arith.divf %159, %160 : vector<16x1xf32>
    %162 = vector.broadcast %154 : vector<16x1xf32> to vector<16x32xf32>
    %163 = arith.subf %146, %162 : vector<16x32xf32>
    %cst_71 = arith.constant 9.99999974E-6 : f32
    %164 = vector.broadcast %cst_71 : f32 to vector<16x1xf32>
    %165 = arith.addf %161, %164 : vector<16x1xf32>
    %166 = math.rsqrt %165 : vector<16x1xf32>
    %167 = vector.broadcast %166 : vector<16x1xf32> to vector<16x32xf32>
    %168 = arith.mulf %163, %167 : vector<16x32xf32>
    %169 = vector.broadcast %148 : vector<1x32xf32> to vector<16x32xf32>
    %170 = arith.mulf %168, %169 : vector<16x32xf32>
    %171 = vector.broadcast %150 : vector<1x32xf32> to vector<16x32xf32>
    %172 = arith.addf %170, %171 : vector<16x32xf32>
    %c0_72 = arith.constant 0 : index
    %c0_73 = arith.constant 0 : index
    %173 = vector.load %arg20[%c0_72, %c0_73] : memref<16x32xf32, #tpu.memory_space<vmem>>, vector<16x32xf32>
    tpu.vector_store %arg20[%c0_72, %c0_73], %172 {strides = array<i32>} : memref<16x32xf32, #tpu.memory_space<vmem>>, vector<16x32xf32>,
    %c1_i32 = arith.constant 1 : i32
    %174 = arith.cmpi eq, %arg0, %c1_i32 : i32
    %175 = arith.extui %174 : i1 to i32
    %c0_i32_74 = arith.constant 0 : i32
    %176 = arith.cmpi ne, %175, %c0_i32_74 : i32
    scf.if %176 {
      %c0_75 = arith.constant 0 : index
      %c0_76 = arith.constant 0 : index
      %177 = vector.load %arg17[%c0_75, %c0_76] : memref<32x3xf32, #tpu.memory_space<vmem>>, vector<32x3xf32>
      %cst_77 = arith.constant dense<0.000000e+00> : vector<16x3xf32>
      %178 = tpu.matmul %172, %177, %cst_77 {dimension_numbers = #tpu.dot_dimension_numbers<[1], [0], [0], [1], [0, 0, 1, 1], [], []>} : vector<16x32xf32>, vector<32x3xf32>, vector<16x3xf32> -> vector<16x3xf32>
      %c0_78 = arith.constant 0 : index
      %c0_79 = arith.constant 0 : index
      %179 = vector.load %arg18[%c0_78, %c0_79] : memref<1x3xf32, #tpu.memory_space<vmem>>, vector<1x3xf32>
      %180 = vector.broadcast %179 : vector<1x3xf32> to vector<16x3xf32>
      %181 = arith.addf %178, %180 : vector<16x3xf32>
      %c0_80 = arith.constant 0 : index
      %c0_81 = arith.constant 0 : index
      %182 = vector.load %arg19[%c0_80, %c0_81] : memref<16x3xf32, #tpu.memory_space<vmem>>, vector<16x3xf32>
      tpu.vector_store %arg19[%c0_80, %c0_81], %181 {strides = array<i32>} : memref<16x3xf32, #tpu.memory_space<vmem>>, vector<16x3xf32>,
    } else {
    }
    return
  }
  func.func @transform_0(%arg0: i32) -> (i32, i32) {
    %c0_i32 = arith.constant 0 : i32
    %c0_i32_0 = arith.constant 0 : i32
    %c0_i32_1 = arith.constant 0 : i32
    return %c0_i32, %c0_i32_0 : i32, i32
  }
  func.func @transform_1(%arg0: i32) -> (i32, i32) {
    %c0_i32 = arith.constant 0 : i32
    %c0_i32_0 = arith.constant 0 : i32
    %c0_i32_1 = arith.constant 0 : i32
    return %c0_i32, %c0_i32_0 : i32, i32
  }
  func.func @transform_2(%arg0: i32) -> (i32, i32) {
    %c0_i32 = arith.constant 0 : i32
    %c0_i32_0 = arith.constant 0 : i32
    %c0_i32_1 = arith.constant 0 : i32
    return %c0_i32, %c0_i32_0 : i32, i32
  }
  func.func @transform_3(%arg0: i32) -> (i32, i32) {
    %c0_i32 = arith.constant 0 : i32
    %c0_i32_0 = arith.constant 0 : i32
    %c0_i32_1 = arith.constant 0 : i32
    return %c0_i32, %c0_i32_0 : i32, i32
  }
  func.func @transform_4(%arg0: i32) -> (i32, i32, i32) {
    %c0_i32 = arith.constant 0 : i32
    %c0_i32_0 = arith.constant 0 : i32
    %c0_i32_1 = arith.constant 0 : i32
    return %arg0, %c0_i32, %c0_i32_0 : i32, i32, i32
  }
  func.func @transform_5(%arg0: i32) -> (i32, i32, i32) {
    %c0_i32 = arith.constant 0 : i32
    %c0_i32_0 = arith.constant 0 : i32
    %c0_i32_1 = arith.constant 0 : i32
    return %arg0, %c0_i32, %c0_i32_0 : i32, i32, i32
  }
  func.func @transform_6(%arg0: i32) -> (i32, i32, i32) {
    %c0_i32 = arith.constant 0 : i32
    %c0_i32_0 = arith.constant 0 : i32
    %c0_i32_1 = arith.constant 0 : i32
    return %arg0, %c0_i32, %c0_i32_0 : i32, i32, i32
  }
  func.func @transform_7(%arg0: i32) -> (i32, i32, i32) {
    %c0_i32 = arith.constant 0 : i32
    %c0_i32_0 = arith.constant 0 : i32
    %c0_i32_1 = arith.constant 0 : i32
    return %arg0, %c0_i32, %c0_i32_0 : i32, i32, i32
  }
  func.func @transform_8(%arg0: i32) -> (i32, i32, i32) {
    %c0_i32 = arith.constant 0 : i32
    %c0_i32_0 = arith.constant 0 : i32
    %c0_i32_1 = arith.constant 0 : i32
    return %arg0, %c0_i32, %c0_i32_0 : i32, i32, i32
  }
  func.func @transform_9(%arg0: i32) -> (i32, i32, i32) {
    %c0_i32 = arith.constant 0 : i32
    %c0_i32_0 = arith.constant 0 : i32
    %c0_i32_1 = arith.constant 0 : i32
    return %arg0, %c0_i32, %c0_i32_0 : i32, i32, i32
  }
  func.func @transform_10(%arg0: i32) -> (i32, i32, i32) {
    %c0_i32 = arith.constant 0 : i32
    %c0_i32_0 = arith.constant 0 : i32
    %c0_i32_1 = arith.constant 0 : i32
    return %arg0, %c0_i32, %c0_i32_0 : i32, i32, i32
  }
  func.func @transform_11(%arg0: i32) -> (i32, i32, i32) {
    %c0_i32 = arith.constant 0 : i32
    %c0_i32_0 = arith.constant 0 : i32
    %c0_i32_1 = arith.constant 0 : i32
    return %arg0, %c0_i32, %c0_i32_0 : i32, i32, i32
  }
  func.func @transform_12(%arg0: i32) -> (i32, i32, i32) {
    %c0_i32 = arith.constant 0 : i32
    %c0_i32_0 = arith.constant 0 : i32
    %c0_i32_1 = arith.constant 0 : i32
    return %arg0, %c0_i32, %c0_i32_0 : i32, i32, i32
  }
  func.func @transform_13(%arg0: i32) -> (i32, i32, i32) {
    %c0_i32 = arith.constant 0 : i32
    %c0_i32_0 = arith.constant 0 : i32
    %c0_i32_1 = arith.constant 0 : i32
    return %arg0, %c0_i32, %c0_i32_0 : i32, i32, i32
  }
  func.func @transform_14(%arg0: i32) -> (i32, i32, i32) {
    %c0_i32 = arith.constant 0 : i32
    %c0_i32_0 = arith.constant 0 : i32
    %c0_i32_1 = arith.constant 0 : i32
    return %arg0, %c0_i32, %c0_i32_0 : i32, i32, i32
  }
  func.func @transform_15(%arg0: i32) -> (i32, i32, i32) {
    %c0_i32 = arith.constant 0 : i32
    %c0_i32_0 = arith.constant 0 : i32
    %c0_i32_1 = arith.constant 0 : i32
    return %arg0, %c0_i32, %c0_i32_0 : i32, i32, i32
  }
  func.func @transform_16(%arg0: i32) -> (i32, i32) {
    %c0_i32 = arith.constant 0 : i32
    %c0_i32_0 = arith.constant 0 : i32
    %c0_i32_1 = arith.constant 0 : i32
    return %c0_i32, %c0_i32_0 : i32, i32
  }
  func.func @transform_17(%arg0: i32) -> (i32, i32) {
    %c0_i32 = arith.constant 0 : i32
    %c0_i32_0 = arith.constant 0 : i32
    %c0_i32_1 = arith.constant 0 : i32
    return %c0_i32, %c0_i32_0 : i32, i32
  }
  func.func @transform_18(%arg0: i32) -> (i32, i32) {
    %c0_i32 = arith.constant 0 : i32
    %c0_i32_0 = arith.constant 0 : i32
    %c0_i32_1 = arith.constant 0 : i32
    return %c0_i32, %c0_i32_0 : i32, i32
  }
}

</mosaic_0001>

<bundles_post_ra>
// kernel: tpu_custom_call.1
= control target key start
LH: loop header
LB: loop body
LE: loop exit
PB: predicated region body
PF: predicated region fallthrough
CT: control target
= control target key end

     0   :  { %s3460_s27 = smov 0   ;;  %s3798_s0 = inlined_call_operand.vmem [shape: f32[16,4], index: 0, kind: input, shape index: {}]   ;;  %s3799_s1 = inlined_call_operand.vmem [shape: f32[4,32], index: 1, kind: input, shape index: {}]   ;;  %s3800_s2 = inlined_call_operand.vmem [shape: f32[1,32], index: 2, kind: input, shape index: {}]   ;;  %s3801_s3 = inlined_call_operand.vmem [shape: f32[8,32], index: 3, kind: input, shape index: {}]   ;;  %s3802_s4 = inlined_call_operand.vmem [shape: f32[2,32,96], index: 4, kind: input, shape index: {}]   ;;  %s3803_s5 = inlined_call_operand.vmem [shape: f32[2,1,96], index: 5, kind: input, shape index: {}]   ;;  %s3804_s6 = inlined_call_operand.vmem [shape: f32[2,32,32], index: 6, kind: input, shape index: {}]   ;;  %s3805_s7 = inlined_call_operand.vmem [shape: f32[2,1,32], index: 7, kind: input, shape index: {}]   ;;  %s3806_s8 = inlined_call_operand.vmem [shape: f32[2,32,128], index: 8, kind: input, shape index: {}]   ;;  %s3807_s9 = inlined_call_operand.vmem [shape: f32[2,1,128], index: 9, kind: input, shape index: {}]   ;;  %s3808_s10 = inlined_call_operand.vmem [shape: f32[2,128,32], index: 10, kind: input, shape index: {}]   ;;  %s3809_s11 = inlined_call_operand.vmem [shape: f32[2,1,32], index: 11, kind: input, shape index: {}]   ;;  %s3810_s12 = inlined_call_operand.vmem [shape: f32[2,1,32], index: 12, kind: input, shape index: {}]   ;;  %s3811_s13 = inlined_call_operand.vmem [shape: f32[2,1,32], index: 13, kind: input, shape index: {}]   ;;  %s3812_s14 = inlined_call_operand.vmem [shape: f32[2,1,32], index: 14, kind: input, shape index: {}]   ;;  %s3813_s15 = inlined_call_operand.vmem [shape: f32[2,1,32], index: 15, kind: input, shape index: {}]   ;;  %s3814_s16 = inlined_call_operand.vmem [shape: f32[32,3], index: 16, kind: input, shape index: {}]   ;;  %s3815_s17 = inlined_call_operand.vmem [shape: f32[1,3], index: 17, kind: input, shape index: {}]   ;;  %s3816_s18 = inlined_call_operand.vmem [shape: f32[16,3], index: 18, kind: output, shape index: {}]  }
   0x1   :  { %3821 = sst [smem:[#allocation4_spill]] %s3798_s0 }
   0x2   :  { %3822 = sst [smem:[#allocation5_spill]] %s3799_s1 }
   0x3   :  { %3823 = sst [smem:[#allocation6_spill]] %s3800_s2 }
   0x4   :  { %3824 = sst [smem:[#allocation7_spill]] %s3802_s4 }
   0x5   :  { %3825 = sst [smem:[#allocation8_spill]] %s3804_s6 }
   0x6   :  { %3826 = sst [smem:[#allocation9_spill]] %s3806_s8 }
   0x7   :  { %3827 = sst [smem:[#allocation10_spill]] %s3807_s9 }
   0x8   :  { %3828 = sst [smem:[#allocation11_spill]] %s3814_s16 }
   0x9   :  { %3829 = sst [smem:[#allocation12_spill]] %s3815_s17 }
   0xa   :  { %3830 = sst [smem:[#allocation13_spill]] %s3816_s18 }
   0xb LB: > { %3831 = sst [smem:[#allocation3_spill]] %s3347_s27  ;;  %s3466_s28 = sadd.s32 4294967295, %s3347_s27   ;;  %s3347_s27 = sphi %s3460_s27, %s28_s27  }
   0xc   : > { %p2910_p0 = scmp.ge.s32.totalorder %s3347_s27, 1  ;;  %p601_p1 = scmp.lt.s32.totalorder %s3347_s27, 3 }
   0xe   : > { %p602_p2 = pnand %p2910_p0, %p601_p1 }
   0xf   : > { %p689_p3 = scmp.lt.s32.totalorder (!%p602_p2), %s3466_s28, 1  ;;  %s3832_s4 = sld [smem:[#allocation7_spill]] (!%p602_p2) }
  0x10   : > { %605 = sbr.rel (%p602_p2) target bundleno = 4555 (0x11cb), region = 92  ;;  %s3833_s6 = sld [smem:[#allocation8_spill]] (!%p602_p2) }
  0x11   : > { %s3834_s8 = sld [smem:[#allocation9_spill]] (!%p602_p2)  ;;  %p2919_p4 = scmp.ne.s32.totalorder (!%p602_p2), %s3466_s28, 0 }
  0x17   : > { %s3472_s29 = scalar_select %p689_p3, %s3466_s28, 1 }
  0x18   : > { %736 = sbr.rel (%p2919_p4) target bundleno = 256 (0x100), region = 96  ;;  %s3836_s23 = sld [smem:[#allocation5_spill]] (!%p2919_p4)  ;;  %vm754_vm0 = vcmask (!%p2919_p4), 1043456   ;;  %vm747_vm1 = vcmask (!%p2919_p4), 31744   ;;  %v833_v5 = vld [vmem:[%s3801_s3] sm:$0xff] (!%p2919_p4)  ;;  %vm836_vm2 = vcmask (!%p2919_p4), 261120  }
  0x19   : > { %s2968_s30 = sshll.u32 %s3472_s29, 5  ;;  %s2971_s21 = sshll.u32 %s3472_s29, 7 }
  0x1a   : > { %s3482_s22 = scalar_lea.vmem %s3832_s4, %s2968_s30  ;;  %s3487_s24 = scalar_lea.vmem %s3833_s6, %s2968_s30 }
  0x1b   : > { %s3496_s16 = scalar_lea.vmem %s3834_s8, %s2968_s30  ;;  %s3506_s2 = scalar_lea.vmem %s3808_s10, %s2971_s21 }
  0x1c   : > { %s720_s25 = scalar_lea.vmem %s3809_s11, %s3472_s29  ;;  %s723_s17 = scalar_lea.vmem %s3810_s12, %s3472_s29 }
  0x1d   : > { %s726_s8 = scalar_lea.vmem %s3811_s13, %s3472_s29  ;;  %s729_s20 = scalar_lea.vmem %s3812_s14, %s3472_s29 }
  0x1e   : > { %s732_s1 = scalar_lea.vmem %s3813_s15, %s3472_s29  ;;  %v739_v0 = vld [vmem:[%s3836_s23] sm:$0xf] (!%p2919_p4)  ;;  %s3837_s18 = sld [smem:[#allocation4_spill]] (!%p2919_p4) }
  0x1f   : > { %3049 = vmatprep.subr.msk.mxu0 %vm754_vm0, %v739_v0  ;;  %s3838_s4 = sld [smem:[#allocation6_spill]] }
  0x20   : > { %3050 = vmatpush3.msk.msra.mxu0 %vm754_vm0, %v739_v0 }
  0x24   : > { %v737_v1 = vld [vmem:[%s3837_s18] sm:$0xff]  ;;  %v738_v2 = vld [vmem:[%s3837_s18 + $0x8] sm:$0xff] }
  0x25   : > { %3051 = vmatprep.mubr.msk.f32.mxu0 %vm747_vm1, %v737_v1  ;;  %v2920_v3 = vld [vmem:[%s3838_s4] ss:$0 sm:$0xff] }
  0x26   : > { %3052 = vmatmul.mubr.msk.f32.vlgmr.msra.gmra.mrb[0].mxu0 %vm747_vm1, %v738_v2 }
  0xf9   : > { %v3053_v4 = vpop.f32.mrb[0].mxu0 }
  0xfa   : > { %v830_v6 = vadd.f32 %v3053_v4, %v2920_v3  ;;  %v824_v7 = vpop.f32.mrb[1].mxu0 }
  0xfb   : > { %v825_v8 = vadd.f32 %v2920_v3, %v824_v7 }
  0xfc   : > { %v835_v9 = vadd.f32 %v833_v5, %v830_v6 }
  0xfd   : > { %v834_v10 = vadd.f32 %v833_v5, %v825_v8 }
  0xfe   : > { %838 = vst.msk [vmem:[#allocation2 + $0x8] sm:$0xff] %vm836_vm2, %v835_v9 }
  0xff   : > { %837 = vst.msk [vmem:[#allocation2] sm:$0xff] %vm836_vm2, %v834_v10 }
 0x100 PF: > { %v841_v11 = vld [vmem:[%s3482_s22] sm:$0xff]  ;;  %v842_v12 = vld [vmem:[%s3482_s22 + $0x8] sm:$0xff]  ;;  %v843_v13 = vld [vmem:[%s3482_s22 + $0x10] sm:$0xff]  ;;  %vm852_vm3 = vcmask 261120   ;;  %v3349_v19 = vmov 0.0   ;;  %vm3350_vm4 = vmmov 0   ;;  %s3839_s27 = scalar_lea.vmem %s3803_s5, %s3472_s29 }
 0x101   : > { %v3213_v14 = vpack.c.bf16 %v842_v12, %v841_v11  ;;  %v844_v15 = vld [vmem:[%s3482_s22 + $0x18] sm:$0xff]  ;;  %3075 = vmatprep.subr.mxu0 %v3349_v19  ;;  %3077 = vmatprep.mubr.msk.f32.mxu0 %vm3350_vm4, %v3349_v19  ;;  %v2924_v20 = vld [vmem:[%s3839_s27] ss:$0 sm:$0xff]  ;;  %s3351_s26 = smov 96   ;;  %vm937_vm5 = vcmask 64512   ;;  %s3352_s30 = smov 64  }
 0x102   : > { %v3217_v17 = vpack.c.bf16 %v844_v15, %v843_v13  ;;  %s3353_s0 = smov 88   ;;  %s3354_s9 = smov 120   ;;  %vm2290_vm6 = vcmask 195584   ;;  %vm2287_vm7 = vcmask 130048  }
 0x103   : > { %3214 = vmatprep.subr.bf16.mxu1 %v3213_v14  ;;  %s3355_s19 = smov 56   ;;  %s3356_s4 = smov 80  }
 0x104   : > { %3216 = vmatpush3.bf16.msra.mxu1 %v3213_v14  ;;  %s3357_s6 = smov 112   ;;  %s3358_s21 = smov 48  }
 0x105   : > { %3218 = vmatprep.subr.bf16.mxu1 %v3217_v17  ;;  %v3552_v18 = vld [vmem:[#allocation2 + $0x8] sm:$0xff]  ;;  %s3359_s22 = smov 72   ;;  %s3360_s23 = smov 104  }
 0x106   : > { %v3548_v16 = vld [vmem:[#allocation2] sm:$0xff]  ;;  %s3361_s27 = smov 40   ;;  %p2962_p5 = scmp.ne.s32.totalorder %s3466_s28, 1 }
 0x107   : > { %3062 = vmatprep.mubr.msk.f32.mxu1 %vm852_vm3, %v3548_v16  ;;  %vm2768_vm8 = vcmask (!%p2962_p5), 23552  }
 0x108   : > { %3220 = vmatpush3.bf16.msra.mxu1 %v3217_v17 }
 0x109   : > { %3065 = vmatprep.subr.mxu1 %v3349_v19 }
 0x10b   : > { %3063 = vmatmul.mubr.msk.f32.vlgmr.msra.gmra.mrb[0].mxu1 %vm852_vm3, %v3552_v18 }
 0x10c   : > { %3067 = vmatprep.mubr.msk.f32.mxu1 %vm3350_vm4, %v3349_v19 }
 0x1de   : > { %v3064_v21 = vpop.f32.mrb[0].mxu1 }
 0x1df   : > { %v925_v22 = vpop.f32.mrb[1].mxu1  ;;  %v3570_v24 = vadd.f32 %v3064_v21, %v2924_v20 }
 0x1e0   : > { %v3567_v23 = vadd.f32 %v2924_v20, %v925_v22 }
 0x1e2   : > { %935 = vrot.lane.b32.xlu0 %v3567_v23, %s3351_s26 }
 0x1e6   : > { %1013 = vrot.lane.b32.xlu0 %v3570_v24, %s3351_s26  ;;  %s3362_s26 = smov 8  }
 0x254   : > { %v936_v25 = vpop.permute.xlu0 %935 }
 0x255   : > { %3066 = vmatpush3.xpose.msk.msra.mxu1 %vm937_vm5, %v936_v25 }
 0x256   : > { %3070 = vmatprep.subr.mxu1 %v3349_v19 }
 0x258   : > { %3068 = vmatmul.mubr.msk.f32.vlgmr.msra.gmra.mrb[2].mxu1 %vm937_vm5, %v3567_v23  ;;  %v1014_v26 = vpop.permute.xlu0 %1013 }
 0x259   : > { %3071 = vmatpush3.xpose.msk.msra.mxu1 %vm937_vm5, %v1014_v26  ;;  %3072 = vmatprep.mubr.msk.f32.mxu1 %vm3350_vm4, %v3349_v19 }
 0x25a   : > { %3080 = vmatprep.subr.mxu1 %v3349_v19 }
 0x25c   : > { %3073 = vmatmul.mubr.msk.f32.vlgmr.msra.gmra.mrb[4].mxu1 %vm937_vm5, %v3570_v24 }
 0x25d   : > { %3082 = vmatprep.mubr.msk.f32.mxu1 %vm3350_vm4, %v3349_v19 }
 0x32b   : > { %v1008_v27 = vpop.f32.mrb[2].mxu1 }
 0x32c   : > { %v1089_v28 = vmul.f32 0.35355338, %v1008_v27  ;;  %v3069_v29 = vpop.f32.mrb[3].mxu1 }
 0x32e   : > { %v1091_v30 = vsel %vm937_vm5, %v1089_v28, -inf }
 0x32f   : > { %1092 = vmax.xlane.f32.xlu1 %v1091_v30  ;;  %v1085_v31 = vpop.f32.mrb[4].mxu1 }
 0x330   : > { %v1090_v32 = vmul.f32 0.35355338, %v1085_v31  ;;  %v3074_v33 = vpop.f32.mrb[5].mxu1 }
 0x332   : > { %v1094_v34 = vsel %vm937_vm5, %v1090_v32, -inf }
 0x333   : > { %1095 = vmax.xlane.f32.xlu1 %v1094_v34 }
 0x344   : > { %1113 = vrot.lane.b32.xlu1 %v3567_v23, %s3352_s30 }
 0x348   : > { %1189 = vrot.lane.b32.xlu1 %v3570_v24, %s3352_s30  ;;  %s3363_s30 = smov 16  }
 0x34c   : > { %1267 = vrot.lane.b32.xlu1 %v3567_v23, %s3353_s0 }
 0x350   : > { %1345 = vrot.lane.b32.xlu1 %v3570_v24, %s3353_s0  ;;  %s3364_s0 = smov 24  }
 0x3bc   : > { %v1093_v35 = vpop.xlane.xlu1 %1092 }
 0x3bd   : > { %v1097_v36 = vsub.f32 %v1089_v28, %v1093_v35 }
 0x3bf   : > { %v1099_v37 = vmul.f32 1.442695, %v1097_v36 }
 0x3c0   : > { %v1096_v38 = vpop.xlane.xlu1 %1095 }
 0x3c1   : > { %3301 = vpow2.f32 %v1099_v37  ;;  %v1098_v39 = vsub.f32 %v1090_v32, %v1096_v38 }
 0x3c3   : > { %v1101_v40 = vmul.f32 1.442695, %v1098_v39 }
 0x3c4   : > { %v1114_v41 = vpop.permute.xlu1 %1113 }
 0x3c5   : > { %3303 = vpow2.f32 %v1101_v40  ;;  %3076 = vmatpush3.msra.mxu0 %v1114_v41 }
 0x3c6   : > { %3085 = vmatprep.subr.mxu0 %v3349_v19 }
 0x3c8   : > { %v1190_v42 = vpop.permute.xlu1 %1189 }
 0x3c9   : > { %3081 = vmatpush3.msra.mxu1 %v1190_v42 }
 0x3ca   : > { %3090 = vmatprep.subr.mxu1 %v3349_v19 }
 0x3cb   : > { %v3302_v43 = vpop.eup %3301 }
 0x3cc   : > { %v1103_v44 = vsel %vm937_vm5, %v3302_v43, 0.0  ;;  %v1268_v47 = vpop.permute.xlu1 %1267 }
 0x3cd   : > { %1104 = vadd.xlane.f32.xlu0 %v1103_v44 }
 0x3cf   : > { %v3304_v45 = vpop.eup %3303 }
 0x3d0   : > { %v1106_v46 = vsel %vm937_vm5, %v3304_v45, 0.0  ;;  %v1346_v48 = vpop.permute.xlu1 %1345 }
 0x3d1   : > { %1107 = vadd.xlane.f32.xlu1 %v1106_v46 }
 0x3e2   : > { %1343 = vrot.lane.b32.xlu1 %v3570_v24, %s3354_s9 }
 0x3e3   : > { %1265 = vrot.lane.b32.xlu0 %v3567_v23, %s3354_s9  ;;  %s3843_s9 = sld [smem:[#allocation11_spill]] (!%p2962_p5) }
 0x45a   : > { %v1105_v49 = vpop.xlane.xlu0 %1104 }
 0x45b   : > { %3305 = vrcp.f32 %v1105_v49 }
 0x45e   : > { %v1108_v50 = vpop.xlane.xlu1 %1107  ;;  %v1266_v55 = vpop.permute.xlu0 %1265 }
 0x45f   : > { %3307 = vrcp.f32 %v1108_v50 }
 0x462   : > { %v1344_v56 = vpop.permute.xlu1 %1343 }
 0x465   : > { %v3306_v51 = vpop.eup %3305 }
 0x466   : > { %v1111_v52 = vmul.f32 %v3306_v51, %v3302_v43 }
 0x468   : > { %3078 = vmatmul.mubr.msk.f32.vlgmr.msra.gmra.mrb[0].mxu0 %vm937_vm5, %v1111_v52 }
 0x469   : > { %v3308_v53 = vpop.eup %3307  ;;  %3086 = vmatpush3.xpose.msk.msra.mxu0 %vm937_vm5, %v1268_v47  ;;  %3087 = vmatprep.mubr.msk.f32.mxu0 %vm3350_vm4, %v3349_v19 }
 0x46a   : > { %v1112_v54 = vmul.f32 %v3308_v53, %v3304_v45  ;;  %3095 = vmatprep.subr.mxu0 %v3349_v19 }
 0x46c   : > { %3083 = vmatmul.mubr.msk.f32.vlgmr.msra.gmra.mrb[6].mxu1 %vm937_vm5, %v1112_v54  ;;  %3088 = vmatmul.mubr.msk.f32.vlgmr.msra.gmra.mrb[2].mxu0 %vm937_vm5, %v1266_v55 }
 0x46d   : > { %3091 = vmatpush3.xpose.msk.msra.mxu1 %vm937_vm5, %v1346_v48  ;;  %3092 = vmatprep.mubr.msk.f32.mxu1 %vm3350_vm4, %v3349_v19 }
 0x46e   : > { %3100 = vmatprep.subr.mxu1 %v3349_v19  ;;  %3097 = vmatprep.mubr.msk.f32.mxu0 %vm3350_vm4, %v3349_v19 }
 0x470   : > { %3093 = vmatmul.mubr.msk.f32.vlgmr.msra.gmra.mrb[8].mxu1 %vm937_vm5, %v1344_v56 }
 0x471   : > { %3102 = vmatprep.mubr.msk.f32.mxu1 %vm3350_vm4, %v3349_v19 }
 0x53b   : > { %v3613_v57 = vpop.f32.mrb[0].mxu0 }
 0x53c   : > { %v3079_v58 = vpop.f32.mrb[1].mxu0 }
 0x53f   : > { %v3615_v59 = vpop.f32.mrb[6].mxu1  ;;  %v1339_v60 = vpop.f32.mrb[2].mxu0 }
 0x540   : > { %v1421_v61 = vmul.f32 0.35355338, %v1339_v60  ;;  %v3084_v62 = vpop.f32.mrb[7].mxu1  ;;  %v3089_v63 = vpop.f32.mrb[3].mxu0 }
 0x542   : > { %v1423_v0 = vsel %vm937_vm5, %v1421_v61, -inf }
 0x543   : > { %v1417_v1 = vpop.f32.mrb[8].mxu1  ;;  %1424 = vmax.xlane.f32.xlu1 %v1423_v0 }
 0x544   : > { %v1422_v2 = vmul.f32 0.35355338, %v1417_v1  ;;  %v3094_v3 = vpop.f32.mrb[9].mxu1 }
 0x546   : > { %v1426_v4 = vsel %vm937_vm5, %v1422_v2, -inf }
 0x547   : > { %1427 = vmax.xlane.f32.xlu0 %v1426_v4 }
 0x554   : > { %1445 = vrot.lane.b32.xlu1 %v3567_v23, %s3355_s19 }
 0x558   : > { %1599 = vrot.lane.b32.xlu1 %v3567_v23, %s3356_s4 }
 0x55c   : > { %1677 = vrot.lane.b32.xlu1 %v3570_v24, %s3356_s4 }
 0x55d   : > { %1521 = vrot.lane.b32.xlu0 %v3570_v24, %s3355_s19  ;;  %s3840_s19 = scalar_lea.vmem %s3805_s7, %s3472_s29 }
 0x561   : > { %1597 = vrot.lane.b32.xlu0 %v3567_v23, %s3357_s6 }
 0x5d0   : > { %v1425_v5 = vpop.xlane.xlu1 %1424 }
 0x5d1   : > { %v1429_v6 = vsub.f32 %v1421_v61, %v1425_v5 }
 0x5d3   : > { %v1431_v7 = vmul.f32 1.442695, %v1429_v6 }
 0x5d4   : > { %v1446_v8 = vpop.permute.xlu1 %1445  ;;  %v1428_v9 = vpop.xlane.xlu0 %1427 }
 0x5d5   : > { %3309 = vpow2.f32 %v1431_v7  ;;  %v1430_v10 = vsub.f32 %v1422_v2, %v1428_v9  ;;  %3096 = vmatpush3.msra.mxu0 %v1446_v8 }
 0x5d6   : > { %3105 = vmatprep.subr.mxu0 %v3349_v19 }
 0x5d7   : > { %v1433_v11 = vmul.f32 1.442695, %v1430_v10 }
 0x5d8   : > { %v1522_v12 = vpop.permute.xlu0 %1521  ;;  %v1600_v20 = vpop.permute.xlu1 %1599 }
 0x5d9   : > { %3311 = vpow2.f32 %v1433_v11  ;;  %3101 = vmatpush3.msra.mxu1 %v1522_v12 }
 0x5da   : > { %3110 = vmatprep.subr.mxu1 %v3349_v19 }
 0x5dc   : > { %v1678_v21 = vpop.permute.xlu1 %1677  ;;  %v1598_v30 = vpop.permute.xlu0 %1597 }
 0x5df   : > { %v3310_v13 = vpop.eup %3309 }
 0x5e0   : > { %v1435_v14 = vsel %vm937_vm5, %v3310_v13, 0.0 }
 0x5e1   : > { %1436 = vadd.xlane.f32.xlu1 %v1435_v14 }
 0x5e3   : > { %v3312_v15 = vpop.eup %3311 }
 0x5e4   : > { %v1438_v17 = vsel %vm937_vm5, %v3312_v15, 0.0 }
 0x5e5   : > { %1439 = vadd.xlane.f32.xlu1 %v1438_v17 }
 0x5f6   : > { %1675 = vrot.lane.b32.xlu1 %v3570_v24, %s3357_s6 }
 0x66e   : > { %v1437_v22 = vpop.xlane.xlu1 %1436 }
 0x66f   : > { %3313 = vrcp.f32 %v1437_v22 }
 0x672   : > { %v1440_v25 = vpop.xlane.xlu1 %1439 }
 0x673   : > { %3315 = vrcp.f32 %v1440_v25 }
 0x676   : > { %v1676_v31 = vpop.permute.xlu1 %1675 }
 0x679   : > { %v3314_v26 = vpop.eup %3313 }
 0x67a   : > { %v1443_v27 = vmul.f32 %v3314_v26, %v3310_v13 }
 0x67c   : > { %3098 = vmatmul.mubr.msk.f32.vlgmr.msra.gmra.mrb[4].mxu0 %vm937_vm5, %v1443_v27 }
 0x67d   : > { %v3316_v28 = vpop.eup %3315  ;;  %3106 = vmatpush3.xpose.msk.msra.mxu0 %vm937_vm5, %v1600_v20  ;;  %3107 = vmatprep.mubr.msk.f32.mxu0 %vm3350_vm4, %v3349_v19 }
 0x67e   : > { %v1444_v29 = vmul.f32 %v3316_v28, %v3312_v15  ;;  %3115 = vmatprep.subr.mxu0 %v3349_v19 }
 0x680   : > { %3103 = vmatmul.mubr.msk.f32.vlgmr.msra.gmra.mrb[10].mxu1 %vm937_vm5, %v1444_v29  ;;  %3108 = vmatmul.mubr.msk.f32.vlgmr.msra.gmra.mrb[6].mxu0 %vm937_vm5, %v1598_v30 }
 0x681   : > { %3111 = vmatpush3.xpose.msk.msra.mxu1 %vm937_vm5, %v1678_v21  ;;  %3112 = vmatprep.mubr.msk.f32.mxu1 %vm3350_vm4, %v3349_v19 }
 0x682   : > { %3120 = vmatprep.subr.mxu1 %v3349_v19  ;;  %3117 = vmatprep.mubr.msk.f32.mxu0 %vm3350_vm4, %v3349_v19 }
 0x684   : > { %3113 = vmatmul.mubr.msk.f32.vlgmr.msra.gmra.mrb[12].mxu1 %vm937_vm5, %v1676_v31 }
 0x685   : > { %3122 = vmatprep.mubr.msk.f32.mxu1 %vm3350_vm4, %v3349_v19 }
 0x74f   : > { %v3645_v32 = vpop.f32.mrb[4].mxu0 }
 0x750   : > { %v3099_v33 = vpop.f32.mrb[5].mxu0 }
 0x753   : > { %v3647_v34 = vpop.f32.mrb[10].mxu1  ;;  %v1671_v35 = vpop.f32.mrb[6].mxu0 }
 0x754   : > { %v1753_v36 = vmul.f32 0.35355338, %v1671_v35  ;;  %v3104_v37 = vpop.f32.mrb[11].mxu1  ;;  %v3109_v38 = vpop.f32.mrb[7].mxu0 }
 0x755   : > { %v2293_v37 = vld [vmem:[%s3487_s24] sm:$0xff]  ;;  %v2294_v38 = vld [vmem:[%s3487_s24 + $0x8] sm:$0xff] }
 0x756   : > { %v1755_v39 = vsel %vm937_vm5, %v1753_v36, -inf }
 0x757   : > { %v1749_v40 = vpop.f32.mrb[12].mxu1  ;;  %1756 = vmax.xlane.f32.xlu0 %v1755_v39  ;;  %v2295_v39 = vld [vmem:[%s3487_s24 + $0x10] sm:$0xff] }
 0x758   : > { %v1754_v41 = vmul.f32 0.35355338, %v1749_v40  ;;  %v3114_v42 = vpop.f32.mrb[13].mxu1  ;;  %v2296_v40 = vld [vmem:[%s3487_s24 + $0x18] sm:$0xff] }
 0x75a   : > { %v1758_v43 = vsel %vm937_vm5, %v1754_v41, -inf }
 0x75b   : > { %1759 = vmax.xlane.f32.xlu1 %v1758_v43 }
 0x76c   : > { %1777 = vrot.lane.b32.xlu1 %v3567_v23, %s3358_s21 }
 0x76d   : > { %1853 = vrot.lane.b32.xlu0 %v3570_v24, %s3358_s21 }
 0x770   : > { %1931 = vrot.lane.b32.xlu1 %v3567_v23, %s3359_s22 }
 0x774   : > { %2009 = vrot.lane.b32.xlu1 %v3570_v24, %s3359_s22 }
 0x778   : > { %2007 = vrot.lane.b32.xlu1 %v3570_v24, %s3360_s23 }
 0x7e4   : > { %v1757_v44 = vpop.xlane.xlu0 %1756 }
 0x7e5   : > { %v1761_v45 = vsub.f32 %v1753_v36, %v1757_v44 }
 0x7e7   : > { %v1763_v46 = vmul.f32 1.442695, %v1761_v45 }
 0x7e8   : > { %v1760_v47 = vpop.xlane.xlu1 %1759  ;;  %v1854_v48 = vpop.permute.xlu0 %1853 }
 0x7e9   : > { %3317 = vpow2.f32 %v1763_v46  ;;  %v1762_v49 = vsub.f32 %v1754_v41, %v1760_v47  ;;  %3121 = vmatpush3.msra.mxu1 %v1854_v48  ;;  %v3225_v41 = vpack.c.bf16 %v2296_v40, %v2295_v39 }
 0x7ea   : > { %3130 = vmatprep.subr.mxu1 %v3349_v19 }
 0x7eb   : > { %v1765_v50 = vmul.f32 1.442695, %v1762_v49 }
 0x7ec   : > { %v1778_v51 = vpop.permute.xlu1 %1777 }
 0x7ed   : > { %3319 = vpow2.f32 %v1765_v50  ;;  %3116 = vmatpush3.msra.mxu0 %v1778_v51 }
 0x7ee   : > { %3125 = vmatprep.subr.mxu0 %v3349_v19 }
 0x7f0   : > { %v1932_v60 = vpop.permute.xlu1 %1931 }
 0x7f3   : > { %v3318_v52 = vpop.eup %3317 }
 0x7f4   : > { %v1767_v53 = vsel %vm937_vm5, %v3318_v52, 0.0  ;;  %v2010_v0 = vpop.permute.xlu1 %2009 }
 0x7f5   : > { %1768 = vadd.xlane.f32.xlu0 %v1767_v53 }
 0x7f7   : > { %v3320_v54 = vpop.eup %3319 }
 0x7f8   : > { %v1770_v55 = vsel %vm937_vm5, %v3320_v54, 0.0  ;;  %v2008_v3 = vpop.permute.xlu1 %2007 }
 0x7f9   : > { %1771 = vadd.xlane.f32.xlu0 %v1770_v55 }
 0x80f   : > { %1929 = vrot.lane.b32.xlu0 %v3567_v23, %s3360_s23 }
 0x882   : > { %v1769_v56 = vpop.xlane.xlu0 %1768 }
 0x883   : > { %3321 = vrcp.f32 %v1769_v56 }
 0x886   : > { %v1772_v58 = vpop.xlane.xlu0 %1771 }
 0x887   : > { %3323 = vrcp.f32 %v1772_v58 }
 0x88a   : > { %v1930_v2 = vpop.permute.xlu0 %1929 }
 0x88d   : > { %v3322_v61 = vpop.eup %3321 }
 0x88e   : > { %v1775_v62 = vmul.f32 %v3322_v61, %v3318_v52 }
 0x890   : > { %3118 = vmatmul.mubr.msk.f32.vlgmr.msra.gmra.mrb[8].mxu0 %vm937_vm5, %v1775_v62 }
 0x891   : > { %v3324_v63 = vpop.eup %3323  ;;  %3126 = vmatpush3.xpose.msk.msra.mxu0 %vm937_vm5, %v1932_v60  ;;  %3127 = vmatprep.mubr.msk.f32.mxu0 %vm3350_vm4, %v3349_v19 }
 0x892   : > { %v1776_v1 = vmul.f32 %v3324_v63, %v3320_v54  ;;  %3135 = vmatprep.subr.mxu0 %v3349_v19 }
 0x894   : > { %3123 = vmatmul.mubr.msk.f32.vlgmr.msra.gmra.mrb[14].mxu1 %vm937_vm5, %v1776_v1  ;;  %3128 = vmatmul.mubr.msk.f32.vlgmr.msra.gmra.mrb[10].mxu0 %vm937_vm5, %v1930_v2 }
 0x895   : > { %3131 = vmatpush3.xpose.msk.msra.mxu1 %vm937_vm5, %v2010_v0  ;;  %3132 = vmatprep.mubr.msk.f32.mxu1 %vm3350_vm4, %v3349_v19 }
 0x896   : > { %3140 = vmatprep.subr.mxu1 %v3349_v19  ;;  %3137 = vmatprep.mubr.msk.f32.mxu0 %vm3350_vm4, %v3349_v19 }
 0x898   : > { %3133 = vmatmul.mubr.msk.f32.vlgmr.msra.gmra.mrb[16].mxu1 %vm937_vm5, %v2008_v3 }
 0x899   : > { %3142 = vmatprep.mubr.msk.f32.mxu1 %vm3350_vm4, %v3349_v19 }
 0x963   : > { %v1849_v4 = vpop.f32.mrb[8].mxu0 }
 0x964   : > { %v3119_v5 = vpop.f32.mrb[9].mxu0 }
 0x967   : > { %v1925_v6 = vpop.f32.mrb[14].mxu1  ;;  %v2003_v7 = vpop.f32.mrb[10].mxu0 }
 0x968   : > { %v2085_v8 = vmul.f32 0.35355338, %v2003_v7  ;;  %v3124_v9 = vpop.f32.mrb[15].mxu1  ;;  %v3129_v10 = vpop.f32.mrb[11].mxu0 }
 0x96a   : > { %v2087_v11 = vsel %vm937_vm5, %v2085_v8, -inf }
 0x96b   : > { %v2081_v12 = vpop.f32.mrb[16].mxu1  ;;  %2088 = vmax.xlane.f32.xlu0 %v2087_v11  ;;  %v2432_v11 = vld [vmem:[%s3496_s16] sm:$0xff] }
 0x96c   : > { %v2086_v13 = vmul.f32 0.35355338, %v2081_v12  ;;  %v3134_v14 = vpop.f32.mrb[17].mxu1  ;;  %v2433_v12 = vld [vmem:[%s3496_s16 + $0x8] sm:$0xff] }
 0x96d   : > { %v2434_v14 = vld [vmem:[%s3496_s16 + $0x10] sm:$0xff] }
 0x96e   : > { %v2090_v15 = vsel %vm937_vm5, %v2086_v13, -inf }
 0x96f   : > { %2091 = vmax.xlane.f32.xlu1 %v2090_v15  ;;  %v2435_v15 = vld [vmem:[%s3496_s16 + $0x18] sm:$0xff] }
 0x980   : > { %2109 = vrot.lane.b32.xlu1 %v3567_v23, %s3361_s27 }
 0x984   : > { %2263 = vrot.lane.b32.xlu1 %v3645_v32, %s3362_s26 }
 0x988   : > { %2265 = vrot.lane.b32.xlu1 %v3647_v34, %s3362_s26 }
 0x98c   : > { %2273 = vrot.lane.b32.xlu1 %v1925_v6, %s3363_s30 }
 0x9f8   : > { %v2089_v19 = vpop.xlane.xlu0 %2088 }
 0x9f9   : > { %v2093_v17 = vsub.f32 %v2085_v8, %v2089_v19  ;;  %v3233_v19 = vpack.c.bf16 %v2435_v15, %v2434_v14 }
 0x9fb   : > { %v2095_v20 = vmul.f32 1.442695, %v2093_v17  ;;  %v2526_v17 = vld [vmem:[%s3506_s2] sm:$0xff] }
 0x9fc   : > { %v2092_v21 = vpop.xlane.xlu1 %2091 }
 0x9fd   : > { %3325 = vpow2.f32 %v2095_v20  ;;  %v2094_v22 = vsub.f32 %v2086_v13, %v2092_v21  ;;  %v3229_v13 = vpack.c.bf16 %v2433_v12, %v2432_v11  ;;  %v2527_v20 = vld [vmem:[%s3506_s2 + $0x8] sm:$0xff]  ;;  %v2528_v21 = vld [vmem:[%s3506_s2 + $0x10] sm:$0xff] }
 0x9ff   : > { %v2097_v25 = vmul.f32 1.442695, %v2094_v22  ;;  %v3237_v22 = vpack.c.bf16 %v2527_v20, %v2526_v17 }
 0xa00   : > { %v2110_v26 = vpop.permute.xlu1 %2109 }
 0xa01   : > { %3327 = vpow2.f32 %v2097_v25  ;;  %3136 = vmatpush3.msra.mxu0 %v2110_v26  ;;  %v2529_v25 = vld [vmem:[%s3506_s2 + $0x18] sm:$0xff] }
 0xa02   : > { %v3241_v26 = vpack.c.bf16 %v2529_v25, %v2528_v21  ;;  %3238 = vmatprep.subr.bf16.mxu0 %v3237_v22 }
 0xa04   : > { %v2264_v46 = vpop.permute.xlu1 %2263 }
 0xa05   : > { %v2285_v49 = vsel %vm937_vm5, %v3613_v57, %v2264_v46  ;;  %v2951_v57 = vld [vmem:[%s3840_s19] ss:$0 sm:$0xff] }
 0xa07   : > { %v3326_v27 = vpop.eup %3325 }
 0xa08   : > { %v2099_v23 = vsel %vm937_vm5, %v3326_v27, 0.0  ;;  %v2266_v47 = vpop.permute.xlu1 %2265 }
 0xa09   : > { %2100 = vadd.xlane.f32.xlu0 %v2099_v23  ;;  %v2286_v54 = vsel %vm937_vm5, %v3615_v59, %v2266_v47  ;;  %v2531_v23 = vld [vmem:[%s3506_s2 + $0x28] sm:$0xff]  ;;  %v2954_v47 = vld [vmem:[%s723_s17] ss:$0 sm:$0xff]  ;;  %s3844_s17 = sld [smem:[#allocation12_spill]] (!%p2962_p5) }
 0xa0b   : > { %v3328_v28 = vpop.eup %3327 }
 0xa0c   : > { %v2102_v29 = vsel %vm937_vm5, %v3328_v28, 0.0  ;;  %v2274_v50 = vpop.permute.xlu1 %2273 }
 0xa0d   : > { %2103 = vadd.xlane.f32.xlu0 %v2102_v29  ;;  %v2289_v55 = vsel %vm2287_vm7, %v2286_v54, %v2274_v50  ;;  %v2532_v29 = vld [vmem:[%s3506_s2 + $0x30] sm:$0xff] }
 0xa23   : > { %2185 = vrot.lane.b32.xlu0 %v3570_v24, %s3361_s27  ;;  %v3221_v24 = vpack.c.bf16 %v2294_v38, %v2293_v37  ;;  %v2538_v38 = vld [vmem:[%s3506_s2 + $0x60] sm:$0xff] }
 0xa27   : > { %2271 = vrot.lane.b32.xlu0 %v1849_v4, %s3363_s30 }
 0xa96   : > { %v2101_v30 = vpop.xlane.xlu0 %2100 }
 0xa97   : > { %3329 = vrcp.f32 %v2101_v30  ;;  %v2533_v30 = vld [vmem:[%s3506_s2 + $0x38] sm:$0xff] }
 0xa9a   : > { %v2104_v31 = vpop.xlane.xlu0 %2103 }
 0xa9b   : > { %3331 = vrcp.f32 %v2104_v31  ;;  %v3249_v31 = vpack.c.bf16 %v2533_v30, %v2532_v29  ;;  %v2960_v29 = vld [vmem:[%s729_s20] ss:$0 sm:$0xff] }
 0xa9e   : > { %v2186_v32 = vpop.permute.xlu0 %2185 }
 0xa9f   : > { %3141 = vmatpush3.msra.mxu1 %v2186_v32  ;;  %v2534_v32 = vld [vmem:[%s3506_s2 + $0x40] sm:$0xff] }
 0xaa0   : > { %3222 = vmatprep.subr.bf16.mxu1 %v3221_v24 }
 0xaa1   : > { %v3330_v33 = vpop.eup %3329 }
 0xaa2   : > { %v2107_v34 = vmul.f32 %v3330_v33, %v3326_v27  ;;  %v2272_v48 = vpop.permute.xlu0 %2271  ;;  %v2530_v27 = vld [vmem:[%s3506_s2 + $0x20] sm:$0xff]  ;;  %v2535_v33 = vld [vmem:[%s3506_s2 + $0x48] sm:$0xff] }
 0xaa3   : > { %v2288_v51 = vsel %vm2287_vm7, %v2285_v49, %v2272_v48  ;;  %v2955_v49 = vld [vmem:[%s726_s8] ss:$0 sm:$0xff]  ;;  %s3841_s8 = sld [smem:[#allocation10_spill]] }
 0xaa4   : > { %3138 = vmatmul.mubr.msk.f32.vlgmr.msra.gmra.mrb[12].mxu0 %vm937_vm5, %v2107_v34  ;;  %v3253_v34 = vpack.c.bf16 %v2535_v33, %v2534_v32  ;;  %v2961_v32 = vld [vmem:[%s732_s1] ss:$0 sm:$0xff] }
 0xaa5   : > { %v3332_v35 = vpop.eup %3331  ;;  %3240 = vmatpush3.bf16.msra.mxu0 %v3237_v22 }
 0xaa6   : > { %v2108_v36 = vmul.f32 %v3332_v35, %v3328_v28  ;;  %3242 = vmatprep.subr.bf16.mxu0 %v3241_v26  ;;  %v3245_v28 = vpack.c.bf16 %v2531_v23, %v2530_v27  ;;  %v2536_v35 = vld [vmem:[%s3506_s2 + $0x50] sm:$0xff] }
 0xaa8   : > { %3143 = vmatmul.mubr.msk.f32.vlgmr.msra.gmra.mrb[18].mxu1 %vm937_vm5, %v2108_v36  ;;  %v2537_v36 = vld [vmem:[%s3506_s2 + $0x58] sm:$0xff] }
 0xaa9   : > { %3224 = vmatpush3.bf16.msra.mxu1 %v3221_v24  ;;  %3244 = vmatpush3.bf16.msra.mxu0 %v3241_v26  ;;  %v3257_v37 = vpack.c.bf16 %v2537_v36, %v2536_v35  ;;  %v2539_v24 = vld [vmem:[%s3506_s2 + $0x68] sm:$0xff]  ;;  %s3842_s23 = scalar_lea.vmem %s3841_s8, %s3472_s29 }
 0xaaa   : > { %3226 = vmatprep.subr.bf16.mxu1 %v3225_v41  ;;  %3246 = vmatprep.subr.bf16.mxu0 %v3245_v28  ;;  %v3261_v39 = vpack.c.bf16 %v2539_v24, %v2538_v38  ;;  %v2676_v38 = vld [vmem:[%s3843_s9] sm:$0xff] (!%p2962_p5)  ;;  %v2677_v24 = vld [vmem:[%s3843_s9 + $0x8] sm:$0xff] (!%p2962_p5) }
 0xaad   : > { %3228 = vmatpush3.bf16.msra.mxu1 %v3225_v41  ;;  %3248 = vmatpush3.bf16.msra.mxu0 %v3245_v28 }
 0xaae   : > { %3230 = vmatprep.subr.bf16.mxu1 %v3229_v13  ;;  %3250 = vmatprep.subr.bf16.mxu0 %v3249_v31 }
 0xab1   : > { %3252 = vmatpush3.bf16.msra.mxu0 %v3249_v31 }
 0xab2   : > { %3254 = vmatprep.subr.bf16.mxu0 %v3253_v34 }
 0xab5   : > { %3256 = vmatpush3.bf16.msra.mxu0 %v3253_v34 }
 0xab6   : > { %3258 = vmatprep.subr.bf16.mxu0 %v3257_v37 }
 0xab9   : > { %3260 = vmatpush3.bf16.msra.mxu0 %v3257_v37 }
 0xaba   : > { %3262 = vmatprep.subr.bf16.mxu0 %v3261_v39 }
 0xabd   : > { %3264 = vmatpush3.bf16.msra.mxu0 %v3261_v39  ;;  %v2678_v39 = vld [vmem:[%s3843_s9 + $0x10] sm:$0xff] (!%p2962_p5) }
 0xb77   : > { %v2181_v42 = vpop.f32.mrb[12].mxu0 }
 0xb78   : > { %2279 = vrot.lane.b32.xlu0 %v2181_v42, %s3364_s0  ;;  %v3139_v43 = vpop.f32.mrb[13].mxu0 }
 0xb7b   : > { %v2257_v44 = vpop.f32.mrb[18].mxu1 }
 0xb7c   : > { %2281 = vrot.lane.b32.xlu1 %v2257_v44, %s3364_s0  ;;  %v3144_v45 = vpop.f32.mrb[19].mxu1 }
 0xbea   : > { %v2280_v52 = vpop.permute.xlu0 %2279 }
 0xbeb   : > { %v2291_v53 = vsel %vm2290_vm6, %v2288_v51, %v2280_v52 }
 0xbec   : > { %3153 = vmatprep.mubr.msk.f32.mxu1 %vm852_vm3, %v2291_v53 }
 0xbee   : > { %v2282_v56 = vpop.permute.xlu1 %2281 }
 0xbef   : > { %v2292_v58 = vsel %vm2290_vm6, %v2289_v55, %v2282_v56  ;;  %v2540_v56 = vld [vmem:[%s3506_s2 + $0x70] sm:$0xff] }
 0xbf0   : > { %3154 = vmatmul.mubr.msk.f32.vlgmr.msra.gmra.mrb[20].mxu1 %vm852_vm3, %v2292_v58  ;;  %v2541_v58 = vld [vmem:[%s3506_s2 + $0x78] sm:$0xff] }
 0xbf1   : > { %3232 = vmatpush3.bf16.msra.mxu1 %v3229_v13 }
 0xbf2   : > { %3234 = vmatprep.subr.bf16.mxu1 %v3233_v19 }
 0xbf5   : > { %3236 = vmatpush3.bf16.msra.mxu1 %v3233_v19 }
 0xcc3   : > { %v3155_v60 = vpop.f32.mrb[20].mxu1 }
 0xcc4   : > { %v2382_v61 = vadd.f32 %v3155_v60, %v2951_v57  ;;  %v2376_v62 = vpop.f32.mrb[21].mxu1  ;;  %v2956_v60 = vld [vmem:[%s3842_s23] ss:$0 sm:$0xff]  ;;  %s3845_s23 = sld [smem:[#allocation13_spill]] (!%p2962_p5) }
 0xcc5   : > { %v2377_v63 = vadd.f32 %v2951_v57, %v2376_v62  ;;  %v3265_v57 = vpack.c.bf16 %v2541_v58, %v2540_v56 }
 0xcc6   : > { %v2386_v0 = vadd.f32 %v2382_v61, %v3552_v18 }
 0xcc7   : > { %v2385_v1 = vadd.f32 %v2377_v63, %v3548_v16  ;;  %3266 = vmatprep.subr.bf16.mxu0 %v3265_v57 }
 0xcc8   : > { %v2392_v59 = vsel %vm852_vm3, %v2386_v0, 0.0  ;;  %3268 = vmatpush3.bf16.msra.mxu0 %v3265_v57 }
 0xcc9   : > { %2393 = vadd.xlane.f32.xlu1 %v2392_v59  ;;  %v2389_v2 = vsel %vm852_vm3, %v2385_v1, 0.0 }
 0xcca   : > { %2390 = vadd.xlane.f32.xlu0 %v2389_v2  ;;  %v2959_v2 = vld [vmem:[%s720_s25] ss:$0 sm:$0xff] }
 0xd56   : > { %v2394_v3 = vpop.xlane.xlu1 %2393 }
 0xd57   : > { %v2397_v4 = vmul.f32 0.03125, %v2394_v3  ;;  %v2391_v5 = vpop.xlane.xlu0 %2390 }
 0xd58   : > { %v2396_v6 = vmul.f32 0.03125, %v2391_v5 }
 0xd59   : > { %v3706_v7 = vsub.f32 %v2386_v0, %v2397_v4 }
 0xd5a   : > { %v2398_v8 = vsub.f32 %v2385_v1, %v2396_v6 }
 0xd5b   : > { %v2401_v9 = vmul.f32 %v3706_v7, %v3706_v7 }
 0xd5c   : > { %v2400_v18 = vmul.f32 %v2398_v8, %v2398_v8 }
 0xd5d   : > { %v2405_v10 = vsel %vm852_vm3, %v2401_v9, 0.0 }
 0xd5e   : > { %v2402_v16 = vsel %vm852_vm3, %v2400_v18, 0.0 }
 0xd5f   : > { %2403 = vadd.xlane.f32.xlu0 %v2402_v16 }
 0xd63   : > { %2406 = vadd.xlane.f32.xlu0 %v2405_v10 }
 0xdec   : > { %v2404_v40 = vpop.xlane.xlu0 %2403 }
 0xded   : > { %v2408_v41 = vmul.f32 0.03125, %v2404_v40  ;;  %v3269_v40 = vpack.c.bf16 (!%p2962_p5), %v2677_v24, %v2676_v38 }
 0xdef   : > { %v2410_v42 = vadd.f32 1e-05, %v2408_v41  ;;  %v2679_v41 = vld [vmem:[%s3843_s9 + $0x18] sm:$0xff] (!%p2962_p5)  ;;  %3270 = vmatprep.subr.bf16.mxu0 (!%p2962_p5), %v3269_v40 }
 0xdf0   : > { %v2407_v43 = vpop.xlane.xlu0 %2406 }
 0xdf1   : > { %3333 = vrsqrt.f32 %v2410_v42  ;;  %v2409_v44 = vmul.f32 0.03125, %v2407_v43  ;;  %v3273_v42 = vpack.c.bf16 (!%p2962_p5), %v2679_v41, %v2678_v39  ;;  %v2963_v43 = vld [vmem:[%s3844_s17] ss:$0 sm:$0xff] (!%p2962_p5) }
 0xdf3   : > { %v2411_v45 = vadd.f32 1e-05, %v2409_v44 }
 0xdf5   : > { %3335 = vrsqrt.f32 %v2411_v45 }
 0xdfb   : > { %v3334_v46 = vpop.eup %3333 }
 0xdfc   : > { %v2414_v48 = vmul.f32 %v3334_v46, %v2398_v8 }
 0xdfe   : > { %v2422_v50 = vmul.f32 %v2954_v47, %v2414_v48 }
 0xdff   : > { %v3336_v51 = vpop.eup %3335 }
 0xe00   : > { %v2415_v52 = vmul.f32 %v3336_v51, %v3706_v7  ;;  %v2430_v53 = vadd.f32 %v2955_v49, %v2422_v50 }
 0xe02   : > { %v2423_v54 = vmul.f32 %v2954_v47, %v2415_v52  ;;  %3164 = vmatprep.mubr.msk.f32.mxu1 %vm852_vm3, %v2430_v53 }
 0xe04   : > { %v2431_v55 = vadd.f32 %v2955_v49, %v2423_v54 }
 0xe06   : > { %3165 = vmatmul.mubr.msk.f32.vlgmr.msra.gmra.mrb[22].mxu1 %vm852_vm3, %v2431_v55 }
 0xed9   : > { %v3166_v61 = vpop.f32.mrb[22].mxu1 }
 0xeda   : > { %v2521_v62 = vadd.f32 %v3166_v61, %v2956_v60  ;;  %v2515_v63 = vpop.f32.mrb[23].mxu1 }
 0xedb   : > { %v2516_v0 = vadd.f32 %v2956_v60, %v2515_v63 }
 0xedc   : > { %v2525_v59 = vmax.f32 %v2521_v62, 0.0 }
 0xedd   : > { %v2524_v1 = vmax.f32 %v2516_v0, 0.0 }
 0xedf   : > { %3199 = vmatprep.mubr.f32.mxu0 %v2524_v1 }
 0xee0   : > { %3200 = vmatmul.mubr.f32.vlgmr.msra.gmra.mrb[14].mxu0 %v2525_v59 }
 0xee1   : > { %3272 = vmatpush3.bf16.msra.mxu0 (!%p2962_p5), %v3269_v40 }
 0xee2   : > { %3274 = vmatprep.subr.bf16.mxu0 (!%p2962_p5), %v3273_v42 }
 0xee5   : > { %3276 = vmatpush3.bf16.msra.mxu0 (!%p2962_p5), %v3273_v42 }
 0xfb3   : > { %v3201_v3 = vpop.f32.mrb[14].mxu0 }
 0xfb4   : > { %v2621_v4 = vadd.f32 %v3201_v3, %v2959_v2  ;;  %v2615_v5 = vpop.f32.mrb[15].mxu0 }
 0xfb5   : > { %v2616_v6 = vadd.f32 %v2959_v2, %v2615_v5 }
 0xfb6   : > { %v2625_v7 = vadd.f32 %v2621_v4, %v2431_v55 }
 0xfb7   : > { %v2624_v8 = vadd.f32 %v2616_v6, %v2430_v53 }
 0xfb8   : > { %v2631_v18 = vsel %vm852_vm3, %v2625_v7, 0.0 }
 0xfb9   : > { %2632 = vadd.xlane.f32.xlu0 %v2631_v18  ;;  %v2628_v16 = vsel %vm852_vm3, %v2624_v8, 0.0 }
 0xfba   : > { %2629 = vadd.xlane.f32.xlu1 %v2628_v16 }
0x1046   : > { %v2633_v9 = vpop.xlane.xlu0 %2632 }
0x1047   : > { %v2635_v10 = vmul.f32 0.03125, %v2633_v9  ;;  %v2630_v11 = vpop.xlane.xlu1 %2629 }
0x1048   : > { %v2634_v12 = vmul.f32 0.03125, %v2630_v11 }
0x1049   : > { %v2637_v13 = vsub.f32 %v2625_v7, %v2635_v10 }
0x104a   : > { %v2636_v14 = vsub.f32 %v2624_v8, %v2634_v12 }
0x104b   : > { %v2639_v15 = vmul.f32 %v2637_v13, %v2637_v13 }
0x104c   : > { %v2638_v19 = vmul.f32 %v2636_v14, %v2636_v14 }
0x104d   : > { %v2643_v17 = vsel %vm852_vm3, %v2639_v15, 0.0 }
0x104e   : > { %2644 = vadd.xlane.f32.xlu0 %v2643_v17  ;;  %v2640_v20 = vsel %vm852_vm3, %v2638_v19, 0.0 }
0x104f   : > { %2641 = vadd.xlane.f32.xlu1 %v2640_v20 }
0x10db   : > { %v2645_v21 = vpop.xlane.xlu0 %2644 }
0x10dc   : > { %v2647_v22 = vmul.f32 0.03125, %v2645_v21  ;;  %v2642_v25 = vpop.xlane.xlu1 %2641 }
0x10dd   : > { %v2646_v26 = vmul.f32 0.03125, %v2642_v25 }
0x10de   : > { %v2649_v27 = vadd.f32 1e-05, %v2647_v22 }
0x10df   : > { %v2648_v23 = vadd.f32 1e-05, %v2646_v26 }
0x10e0   : > { %3337 = vrsqrt.f32 %v2649_v27 }
0x10e1   : > { %3339 = vrsqrt.f32 %v2648_v23 }
0x10ea   : > { %v3338_v28 = vpop.eup %3337 }
0x10eb   : > { %v3340_v30 = vpop.eup %3339  ;;  %v2653_v31 = vmul.f32 %v3338_v28, %v2637_v13 }
0x10ec   : > { %v2652_v33 = vmul.f32 %v3340_v30, %v2636_v14  ;;  %2675 = sbr.rel (%p2962_p5) target bundleno = 4555 (0x11cb), region = 100 }
0x10ed   : > { %v2661_v34 = vmul.f32 %v2960_v29, %v2653_v31 }
0x10ee   : > { %v2660_v35 = vmul.f32 %v2960_v29, %v2652_v33 }
0x10ef   : > { %v2669_v36 = vadd.f32 %v2961_v32, %v2661_v34 }
0x10f0   : > { %v2668_v37 = vadd.f32 %v2961_v32, %v2660_v35 }
0x10f1   : > { %2671 = vst.msk [vmem:[#allocation2 + $0x8] sm:$0xff] %vm852_vm3, %v2669_v36 }
0x10f2   : > { %2670 = vst.msk [vmem:[#allocation2] sm:$0xff] %vm852_vm3, %v2668_v37  ;;  %3210 = vmatprep.mubr.msk.f32.mxu0 (!%p2962_p5), %vm852_vm3, %v2668_v37 }
0x10f3   : > { %3211 = vmatmul.mubr.msk.f32.vlgmr.msra.gmra.mrb[0].mxu0 %vm852_vm3, %v2669_v36 }
0x11c6   : > { %v3212_v44 = vpop.f32.mrb[0].mxu0 }
0x11c7   : > { %v2765_v45 = vadd.f32 %v3212_v44, %v2963_v43  ;;  %v2759_v46 = vpop.f32.mrb[1].mxu0 }
0x11c8   : > { %v2760_v47 = vadd.f32 %v2963_v43, %v2759_v46 }
0x11c9   : > { %2770 = vst.msk [vmem:[%s3845_s23 + $0x8] sm:$0xff] %vm2768_vm8, %v2765_v45 }
0x11ca   : > { %2769 = vst.msk [vmem:[%s3845_s23] sm:$0xff] %vm2768_vm8, %v2760_v47 }
0x11cb PF: > { %s3846_s2 = sld [smem:[#allocation3_spill]] }
0x11d1   : > { %s28_s27 = sadd.s32 1, %s3846_s2  }
0x11d2   : > { %p25_p6 = scmp.ge.s32.totalorder %s28_s27, 4  }
0x11d4   :  { %27 = sbr.rel (!%p25_p6) target bundleno = 11 (0xb), region = 159 }

</bundles_post_ra>
